<compile_context>
chip_gen: v5e
topology: v5e:2x2
jax: 0.10.0
libtpu: 0.0.40
codegen_flags: <defaults>
</compile_context>

<pallas_src>
import math

import jax
import jax.numpy as jnp
from jax.experimental import pallas as pl
from jax.experimental.pallas import tpu as pltpu

# Model / problem sizes (small, consistent with the module's constructor).
S = 8        # sequence length
N = 2        # batch size
E = 32       # hidden_size (d_model)
H = 4        # num_heads
DH = E // H  # head dim
F = 2048     # dim_feedforward (PyTorch TransformerEncoderLayer default)
L = 2        # num_layers
O = 4        # output_size
EPS = 1e-5   # LayerNorm eps (PyTorch default)


def _layer_norm(y, w, b):
    mu = jnp.mean(y, axis=-1, keepdims=True)
    var = jnp.mean((y - mu) ** 2, axis=-1, keepdims=True)
    return (y - mu) * jax.lax.rsqrt(var + EPS) * w + b


def tft_layer_kernel(x_ref,
                     wq_ref, wk_ref, wv_ref, bq_ref, bk_ref, bv_ref,
                     wo_ref, bo_ref,
                     ln1w_ref, ln1b_ref, ln2w_ref, ln2b_ref,
                     w1_ref, b1_ref, w2_ref, b2_ref,
                     fcw_ref, fcb_ref,
                     o_ref,
                     h_ref):
    """One post-LN encoder layer per grid step; final Linear on the last step.

    The activation h (S, E) is carried across grid steps in VMEM scratch.
    All weights are pre-transposed / head-split on the host so every matmul is
    `x @ W` or a leading-batch-dim einsum (no in-kernel transposes or slices).
    """
    l = pl.program_id(0)

    @pl.when(l == 0)
    def _():
        h_ref[...] = x_ref[...]

    h = h_ref[...]                                   # (S, E) f32
    scale = 1.0 / math.sqrt(DH)

    # ---- multi-head self-attention (Q = K = V = h), head-major layout ----
    wq = wq_ref[0]                                   # (H, E, DH)
    wk = wk_ref[0]
    wv = wv_ref[0]
    qh = jnp.stack([jnp.dot(h, wq[i], preferred_element_type=jnp.float32)
                    for i in range(H)], axis=0) + bq_ref[0]          # (H, S, DH)
    kh = jnp.stack([jnp.dot(h, wk[i], preferred_element_type=jnp.float32)
                    for i in range(H)], axis=0) + bk_ref[0]
    vh = jnp.stack([jnp.dot(h, wv[i], preferred_element_type=jnp.float32)
                    for i in range(H)], axis=0) + bv_ref[0]

    s = jnp.einsum('hqd,hkd->hqk', qh, kh,
                   preferred_element_type=jnp.float32) * scale       # (H, S, S)
    s = s - jnp.max(s, axis=-1, keepdims=True)
    p = jnp.exp(s)
    p = p * pl.reciprocal(jnp.sum(p, axis=-1, keepdims=True), approx=True)
    ctx = jnp.einsum('hqk,hkd->hqd', p, vh,
                     preferred_element_type=jnp.float32)             # (H, S, DH)
    # out_proj folded per head: concat(heads) @ Wo == sum_h ctx[h] @ Wo[h]
    part = jnp.einsum('hqd,hde->hqe', ctx, wo_ref[0],
                      preferred_element_type=jnp.float32)            # (H, S, E)
    attn = bo_ref[0] + sum(part[i] for i in range(H))                # (S, E)

    # residual + LayerNorm1 (dropout1 == identity in eval mode)
    y = _layer_norm(h + attn, ln1w_ref[0], ln1b_ref[0])

    # ---- feed-forward: linear1 -> ReLU -> linear2 (bf16 weights/acts, f32 acc) ----
    h1 = jnp.dot(y.astype(jnp.bfloat16), w1_ref[0],
                 preferred_element_type=jnp.float32) + b1_ref[0]     # (S, F) f32
    h1 = jnp.maximum(h1, 0.0).astype(jnp.bfloat16)                   # fused relu+cast
    z = jnp.dot(h1, w2_ref[0], preferred_element_type=jnp.float32) + b2_ref[0]

    # residual + LayerNorm2 (dropout2 == identity in eval mode)
    h_new = _layer_norm(y + z, ln2w_ref[0], ln2b_ref[0])
    h_ref[...] = h_new

    # Final Linear on the last layer's output.
    # TODO(synk): self.dropout(...) is stochastic; treated as identity (eval mode).
    @pl.when(l == L - 1)
    def _():
        o_ref[...] = jnp.dot(h_new, fcw_ref[...],
                             preferred_element_type=jnp.float32) + fcb_ref[...]


def _stacked_spec(shape):
    """Per-layer block of a weight stacked over the leading L dim."""
    nd = len(shape)
    return pl.BlockSpec((1,) + tuple(shape[1:]),
                        lambda l, _nd=nd: (l,) + (0,) * (_nd - 1))


def _const_spec(shape):
    """Full array, same block for every grid step (fetched once)."""
    nd = len(shape)
    return pl.BlockSpec(tuple(shape), lambda l, _nd=nd: (0,) * _nd)


def tft_forward(x, params):
    """x: (S, N, E) -- PyTorch (batch_first=False) layout. Returns (S, O)."""
    # Dead-batch elimination: `x[:, -1, :]` (last BATCH element) is the only
    # batch element the output depends on; the encoder is per-element.
    x_last = x[:, -1, :]                               # (S, E)

    names_stacked = ("wq", "wk", "wv", "bq", "bk", "bv", "wo", "bo",
                     "ln1w", "ln1b", "ln2w", "ln2b", "w1", "b1", "w2", "b2")
    names_const = ("fc_w", "fc_b")
    stacked = [params[k] for k in names_stacked]
    const = [params[k] for k in names_const]

    in_specs = ([_const_spec(x_last.shape)]
                + [_stacked_spec(a.shape) for a in stacked]
                + [_const_spec(a.shape) for a in const])

    return pl.pallas_call(
        tft_layer_kernel,
        out_shape=jax.ShapeDtypeStruct((S, O), jnp.float32),
        grid=(L,),
        in_specs=in_specs,
        out_specs=pl.BlockSpec((S, O), lambda l: (0, 0)),
        scratch_shapes=[pltpu.VMEM((S, E), jnp.float32)],   # carried activation
        compiler_params=pltpu.CompilerParams(
            dimension_semantics=("arbitrary",)),             # sequential over layers
    )(x_last, *stacked, *const)


def init_params(key):
    """Deterministic synthetic parameters.

    Generated in PyTorch-native shapes, then pre-transposed / head-split for
    `x @ W` and head-batched einsums, stacked over the L layers. FFN weights
    stored in bf16 (f32 accumulation in-kernel)."""
    def nrm(k, shape, scale=0.05):
        return scale * jax.random.normal(k, shape, dtype=jnp.float32)

    wq, wk, wv, wo, w1, w2 = [], [], [], [], [], []
    for l in range(L):
        k = jax.random.fold_in(key, l)
        ks = jax.random.split(k, 4)
        in_proj = nrm(ks[0], (3 * E, E))                     # in_proj_weight (3E, E)
        # x @ Wq.T with output features split into heads: (E, E) -> (H, E, DH)
        wq.append(jnp.transpose(in_proj[:E].T.reshape(E, H, DH), (1, 0, 2)))
        wk.append(jnp.transpose(in_proj[E:2 * E].T.reshape(E, H, DH), (1, 0, 2)))
        wv.append(jnp.transpose(in_proj[2 * E:].T.reshape(E, H, DH), (1, 0, 2)))
        # out_proj.weight (E, E): concat(heads) @ W.T; rows of W.T index (h, d)
        wo.append(nrm(ks[1], (E, E)).T.reshape(H, DH, E))
        w1.append(nrm(ks[2], (F, E)).T)                      # linear1.weight -> (E, F)
        w2.append(nrm(ks[3], (E, F)).T)                      # linear2.weight -> (F, E)
    kf = jax.random.fold_in(key, 1000)
    return dict(
        wq=jnp.stack(wq), wk=jnp.stack(wk), wv=jnp.stack(wv),   # (L, H, E, DH) f32
        bq=jnp.zeros((L, H, 1, DH), jnp.float32),
        bk=jnp.zeros((L, H, 1, DH), jnp.float32),
        bv=jnp.zeros((L, H, 1, DH), jnp.float32),
        wo=jnp.stack(wo),                                       # (L, H, DH, E) f32
        bo=jnp.zeros((L, 1, E), jnp.float32),
        ln1w=jnp.ones((L, 1, E), jnp.float32),
        ln1b=jnp.zeros((L, 1, E), jnp.float32),
        ln2w=jnp.ones((L, 1, E), jnp.float32),
        ln2b=jnp.zeros((L, 1, E), jnp.float32),
        w1=jnp.stack(w1).astype(jnp.bfloat16),                  # (L, E, F) bf16
        b1=jnp.zeros((L, 1, F), jnp.float32),
        w2=jnp.stack(w2).astype(jnp.bfloat16),                  # (L, F, E) bf16
        b2=jnp.zeros((L, 1, E), jnp.float32),
        fc_w=nrm(kf, (O, E)).T,                                 # fc.weight -> (E, O)
        fc_b=jnp.zeros((1, O), jnp.float32),                    # fc.bias
    )


if __name__ == "__main__":
    key = jax.random.PRNGKey(0)
    kx, kp = jax.random.split(key)
    x = jax.random.normal(kx, (S, N, E), dtype=jnp.float32)  # (seq, batch, hidden)
    params = init_params(kp)

    fwd = jax.jit(tft_forward)
    out = jax.block_until_ready(fwd(x, params))

    assert out.shape == (S, O), out.shape
    assert bool(jnp.all(jnp.isfinite(out)))
    print("KERNEL_OK")
</pallas_src>

<mosaic_0001>
module attributes {stable_mosaic.version = 11 : i64} {
  func.func @tft_layer_kernel(%arg0: i32, %arg1: memref<8x32xf32, #tpu.memory_space<vmem>>, %arg2: memref<1x4x32x8xf32, #tpu.memory_space<vmem>>, %arg3: memref<1x4x32x8xf32, #tpu.memory_space<vmem>>, %arg4: memref<1x4x32x8xf32, #tpu.memory_space<vmem>>, %arg5: memref<1x4x1x8xf32, #tpu.memory_space<vmem>>, %arg6: memref<1x4x1x8xf32, #tpu.memory_space<vmem>>, %arg7: memref<1x4x1x8xf32, #tpu.memory_space<vmem>>, %arg8: memref<1x4x8x32xf32, #tpu.memory_space<vmem>>, %arg9: memref<1x1x32xf32, #tpu.memory_space<vmem>>, %arg10: memref<1x1x32xf32, #tpu.memory_space<vmem>>, %arg11: memref<1x1x32xf32, #tpu.memory_space<vmem>>, %arg12: memref<1x1x32xf32, #tpu.memory_space<vmem>>, %arg13: memref<1x1x32xf32, #tpu.memory_space<vmem>>, %arg14: memref<1x32x2048xbf16, #tpu.memory_space<vmem>>, %arg15: memref<1x1x2048xf32, #tpu.memory_space<vmem>>, %arg16: memref<1x2048x32xbf16, #tpu.memory_space<vmem>>, %arg17: memref<1x1x32xf32, #tpu.memory_space<vmem>>, %arg18: memref<32x4xf32, #tpu.memory_space<vmem>>, %arg19: memref<1x4xf32, #tpu.memory_space<vmem>>, %arg20: memref<8x4xf32, #tpu.memory_space<vmem>>, %arg21: memref<8x32xf32, #tpu.memory_space<vmem>>) attributes {dimension_semantics = [#tpu.dimension_semantics<arbitrary>], iteration_bounds = array<i64: 2>, scalar_prefetch = 0 : i64, scratch_operands = 1 : i64, tpu.core_type = #tpu.core_type<tc>, window_params = [{pipeline_mode = #tpu.pipeline_mode<synchronous>, transform_indices = @transform_0, window_bounds = array<i64: 8, 32>}, {transform_indices = @transform_1, window_bounds = array<i64: 1, 4, 32, 8>}, {transform_indices = @transform_2, window_bounds = array<i64: 1, 4, 32, 8>}, {transform_indices = @transform_3, window_bounds = array<i64: 1, 4, 32, 8>}, {transform_indices = @transform_4, window_bounds = array<i64: 1, 4, 1, 8>}, {transform_indices = @transform_5, window_bounds = array<i64: 1, 4, 1, 8>}, {transform_indices = @transform_6, window_bounds = array<i64: 1, 4, 1, 8>}, {transform_indices = @transform_7, window_bounds = array<i64: 1, 4, 8, 32>}, {transform_indices = @transform_8, window_bounds = array<i64: 1, 1, 32>}, {transform_indices = @transform_9, window_bounds = array<i64: 1, 1, 32>}, {transform_indices = @transform_10, window_bounds = array<i64: 1, 1, 32>}, {transform_indices = @transform_11, window_bounds = array<i64: 1, 1, 32>}, {transform_indices = @transform_12, window_bounds = array<i64: 1, 1, 32>}, {transform_indices = @transform_13, window_bounds = array<i64: 1, 32, 2048>}, {transform_indices = @transform_14, window_bounds = array<i64: 1, 1, 2048>}, {transform_indices = @transform_15, window_bounds = array<i64: 1, 2048, 32>}, {transform_indices = @transform_16, window_bounds = array<i64: 1, 1, 32>}, {pipeline_mode = #tpu.pipeline_mode<synchronous>, transform_indices = @transform_17, window_bounds = array<i64: 32, 4>}, {pipeline_mode = #tpu.pipeline_mode<synchronous>, transform_indices = @transform_18, window_bounds = array<i64: 1, 4>}, {pipeline_mode = #tpu.pipeline_mode<synchronous>, transform_indices = @transform_19, window_bounds = array<i64: 8, 4>}]} {
    %c0_i32 = arith.constant 0 : i32
    %0 = arith.cmpi eq, %arg0, %c0_i32 : i32
    %1 = arith.extui %0 : i1 to i32
    %c0_i32_0 = arith.constant 0 : i32
    %2 = arith.cmpi ne, %1, %c0_i32_0 : i32
    scf.if %2 {
      %c0_91 = arith.constant 0 : index
      %c0_92 = arith.constant 0 : index
      %183 = vector.load %arg1[%c0_91, %c0_92] : memref<8x32xf32, #tpu.memory_space<vmem>>, vector<8x32xf32>
      %c0_93 = arith.constant 0 : index
      %c0_94 = arith.constant 0 : index
      %184 = vector.load %arg21[%c0_93, %c0_94] : memref<8x32xf32, #tpu.memory_space<vmem>>, vector<8x32xf32>
      tpu.vector_store %arg21[%c0_93, %c0_94], %183 {strides = array<i32>} : memref<8x32xf32, #tpu.memory_space<vmem>>, vector<8x32xf32>,
    } else {
    }
    %c0 = arith.constant 0 : index
    %c0_1 = arith.constant 0 : index
    %3 = vector.load %arg21[%c0, %c0_1] : memref<8x32xf32, #tpu.memory_space<vmem>>, vector<8x32xf32>
    %c0_2 = arith.constant 0 : index
    %c0_3 = arith.constant 0 : index
    %c0_4 = arith.constant 0 : index
    %c0_5 = arith.constant 0 : index
    %4 = vector.load %arg2[%c0_2, %c0_3, %c0_4, %c0_5] : memref<1x4x32x8xf32, #tpu.memory_space<vmem>>, vector<1x4x32x8xf32>
    %5 = vector.shape_cast %4 : vector<1x4x32x8xf32> to vector<4x32x8xf32>
    %c0_6 = arith.constant 0 : index
    %c0_7 = arith.constant 0 : index
    %c0_8 = arith.constant 0 : index
    %c0_9 = arith.constant 0 : index
    %6 = vector.load %arg3[%c0_6, %c0_7, %c0_8, %c0_9] : memref<1x4x32x8xf32, #tpu.memory_space<vmem>>, vector<1x4x32x8xf32>
    %7 = vector.shape_cast %6 : vector<1x4x32x8xf32> to vector<4x32x8xf32>
    %c0_10 = arith.constant 0 : index
    %c0_11 = arith.constant 0 : index
    %c0_12 = arith.constant 0 : index
    %c0_13 = arith.constant 0 : index
    %8 = vector.load %arg4[%c0_10, %c0_11, %c0_12, %c0_13] : memref<1x4x32x8xf32, #tpu.memory_space<vmem>>, vector<1x4x32x8xf32>
    %9 = vector.shape_cast %8 : vector<1x4x32x8xf32> to vector<4x32x8xf32>
    %10 = vector.extract_strided_slice %5 {offsets = [0, 0, 0], sizes = [1, 32, 8], strides = [1, 1, 1]} : vector<4x32x8xf32> to vector<1x32x8xf32>
    %11 = vector.shape_cast %10 : vector<1x32x8xf32> to vector<32x8xf32>
    %cst = arith.constant dense<0.000000e+00> : vector<8x8xf32>
    %12 = tpu.matmul %3, %11, %cst {dimension_numbers = #tpu.dot_dimension_numbers<[1], [0], [0], [1], [0, 0, 1, 1], [], []>} : vector<8x32xf32>, vector<32x8xf32>, vector<8x8xf32> -> vector<8x8xf32>
    %13 = vector.extract_strided_slice %5 {offsets = [1, 0, 0], sizes = [1, 32, 8], strides = [1, 1, 1]} : vector<4x32x8xf32> to vector<1x32x8xf32>
    %14 = vector.shape_cast %13 : vector<1x32x8xf32> to vector<32x8xf32>
    %cst_14 = arith.constant dense<0.000000e+00> : vector<8x8xf32>
    %15 = tpu.matmul %3, %14, %cst_14 {dimension_numbers = #tpu.dot_dimension_numbers<[1], [0], [0], [1], [0, 0, 1, 1], [], []>} : vector<8x32xf32>, vector<32x8xf32>, vector<8x8xf32> -> vector<8x8xf32>
    %16 = vector.extract_strided_slice %5 {offsets = [2, 0, 0], sizes = [1, 32, 8], strides = [1, 1, 1]} : vector<4x32x8xf32> to vector<1x32x8xf32>
    %17 = vector.shape_cast %16 : vector<1x32x8xf32> to vector<32x8xf32>
    %cst_15 = arith.constant dense<0.000000e+00> : vector<8x8xf32>
    %18 = tpu.matmul %3, %17, %cst_15 {dimension_numbers = #tpu.dot_dimension_numbers<[1], [0], [0], [1], [0, 0, 1, 1], [], []>} : vector<8x32xf32>, vector<32x8xf32>, vector<8x8xf32> -> vector<8x8xf32>
    %19 = vector.extract_strided_slice %5 {offsets = [3, 0, 0], sizes = [1, 32, 8], strides = [1, 1, 1]} : vector<4x32x8xf32> to vector<1x32x8xf32>
    %20 = vector.shape_cast %19 : vector<1x32x8xf32> to vector<32x8xf32>
    %cst_16 = arith.constant dense<0.000000e+00> : vector<8x8xf32>
    %21 = tpu.matmul %3, %20, %cst_16 {dimension_numbers = #tpu.dot_dimension_numbers<[1], [0], [0], [1], [0, 0, 1, 1], [], []>} : vector<8x32xf32>, vector<32x8xf32>, vector<8x8xf32> -> vector<8x8xf32>
    %22 = vector.shape_cast %12 : vector<8x8xf32> to vector<1x8x8xf32>
    %23 = vector.shape_cast %15 : vector<8x8xf32> to vector<1x8x8xf32>
    %24 = vector.shape_cast %18 : vector<8x8xf32> to vector<1x8x8xf32>
    %25 = vector.shape_cast %21 : vector<8x8xf32> to vector<1x8x8xf32>
    %26 = tpu.concatenate %22, %23, %24, %25 in 0 : vector<1x8x8xf32>, vector<1x8x8xf32>, vector<1x8x8xf32>, vector<1x8x8xf32> -> vector<4x8x8xf32>
    %c0_17 = arith.constant 0 : index
    %c0_18 = arith.constant 0 : index
    %c0_19 = arith.constant 0 : index
    %c0_20 = arith.constant 0 : index
    %27 = vector.load %arg5[%c0_17, %c0_18, %c0_19, %c0_20] : memref<1x4x1x8xf32, #tpu.memory_space<vmem>>, vector<1x4x1x8xf32>
    %28 = vector.shape_cast %27 : vector<1x4x1x8xf32> to vector<4x1x8xf32>
    %29 = vector.broadcast %28 : vector<4x1x8xf32> to vector<4x8x8xf32>
    %30 = arith.addf %26, %29 : vector<4x8x8xf32>
    %31 = vector.extract_strided_slice %7 {offsets = [0, 0, 0], sizes = [1, 32, 8], strides = [1, 1, 1]} : vector<4x32x8xf32> to vector<1x32x8xf32>
    %32 = vector.shape_cast %31 : vector<1x32x8xf32> to vector<32x8xf32>
    %cst_21 = arith.constant dense<0.000000e+00> : vector<8x8xf32>
    %33 = tpu.matmul %3, %32, %cst_21 {dimension_numbers = #tpu.dot_dimension_numbers<[1], [0], [0], [1], [0, 0, 1, 1], [], []>} : vector<8x32xf32>, vector<32x8xf32>, vector<8x8xf32> -> vector<8x8xf32>
    %34 = vector.extract_strided_slice %7 {offsets = [1, 0, 0], sizes = [1, 32, 8], strides = [1, 1, 1]} : vector<4x32x8xf32> to vector<1x32x8xf32>
    %35 = vector.shape_cast %34 : vector<1x32x8xf32> to vector<32x8xf32>
    %cst_22 = arith.constant dense<0.000000e+00> : vector<8x8xf32>
    %36 = tpu.matmul %3, %35, %cst_22 {dimension_numbers = #tpu.dot_dimension_numbers<[1], [0], [0], [1], [0, 0, 1, 1], [], []>} : vector<8x32xf32>, vector<32x8xf32>, vector<8x8xf32> -> vector<8x8xf32>
    %37 = vector.extract_strided_slice %7 {offsets = [2, 0, 0], sizes = [1, 32, 8], strides = [1, 1, 1]} : vector<4x32x8xf32> to vector<1x32x8xf32>
    %38 = vector.shape_cast %37 : vector<1x32x8xf32> to vector<32x8xf32>
    %cst_23 = arith.constant dense<0.000000e+00> : vector<8x8xf32>
    %39 = tpu.matmul %3, %38, %cst_23 {dimension_numbers = #tpu.dot_dimension_numbers<[1], [0], [0], [1], [0, 0, 1, 1], [], []>} : vector<8x32xf32>, vector<32x8xf32>, vector<8x8xf32> -> vector<8x8xf32>
    %40 = vector.extract_strided_slice %7 {offsets = [3, 0, 0], sizes = [1, 32, 8], strides = [1, 1, 1]} : vector<4x32x8xf32> to vector<1x32x8xf32>
    %41 = vector.shape_cast %40 : vector<1x32x8xf32> to vector<32x8xf32>
    %cst_24 = arith.constant dense<0.000000e+00> : vector<8x8xf32>
    %42 = tpu.matmul %3, %41, %cst_24 {dimension_numbers = #tpu.dot_dimension_numbers<[1], [0], [0], [1], [0, 0, 1, 1], [], []>} : vector<8x32xf32>, vector<32x8xf32>, vector<8x8xf32> -> vector<8x8xf32>
    %43 = vector.shape_cast %33 : vector<8x8xf32> to vector<1x8x8xf32>
    %44 = vector.shape_cast %36 : vector<8x8xf32> to vector<1x8x8xf32>
    %45 = vector.shape_cast %39 : vector<8x8xf32> to vector<1x8x8xf32>
    %46 = vector.shape_cast %42 : vector<8x8xf32> to vector<1x8x8xf32>
    %47 = tpu.concatenate %43, %44, %45, %46 in 0 : vector<1x8x8xf32>, vector<1x8x8xf32>, vector<1x8x8xf32>, vector<1x8x8xf32> -> vector<4x8x8xf32>
    %c0_25 = arith.constant 0 : index
    %c0_26 = arith.constant 0 : index
    %c0_27 = arith.constant 0 : index
    %c0_28 = arith.constant 0 : index
    %48 = vector.load %arg6[%c0_25, %c0_26, %c0_27, %c0_28] : memref<1x4x1x8xf32, #tpu.memory_space<vmem>>, vector<1x4x1x8xf32>
    %49 = vector.shape_cast %48 : vector<1x4x1x8xf32> to vector<4x1x8xf32>
    %50 = vector.broadcast %49 : vector<4x1x8xf32> to vector<4x8x8xf32>
    %51 = arith.addf %47, %50 : vector<4x8x8xf32>
    %52 = vector.extract_strided_slice %9 {offsets = [0, 0, 0], sizes = [1, 32, 8], strides = [1, 1, 1]} : vector<4x32x8xf32> to vector<1x32x8xf32>
    %53 = vector.shape_cast %52 : vector<1x32x8xf32> to vector<32x8xf32>
    %cst_29 = arith.constant dense<0.000000e+00> : vector<8x8xf32>
    %54 = tpu.matmul %3, %53, %cst_29 {dimension_numbers = #tpu.dot_dimension_numbers<[1], [0], [0], [1], [0, 0, 1, 1], [], []>} : vector<8x32xf32>, vector<32x8xf32>, vector<8x8xf32> -> vector<8x8xf32>
    %55 = vector.extract_strided_slice %9 {offsets = [1, 0, 0], sizes = [1, 32, 8], strides = [1, 1, 1]} : vector<4x32x8xf32> to vector<1x32x8xf32>
    %56 = vector.shape_cast %55 : vector<1x32x8xf32> to vector<32x8xf32>
    %cst_30 = arith.constant dense<0.000000e+00> : vector<8x8xf32>
    %57 = tpu.matmul %3, %56, %cst_30 {dimension_numbers = #tpu.dot_dimension_numbers<[1], [0], [0], [1], [0, 0, 1, 1], [], []>} : vector<8x32xf32>, vector<32x8xf32>, vector<8x8xf32> -> vector<8x8xf32>
    %58 = vector.extract_strided_slice %9 {offsets = [2, 0, 0], sizes = [1, 32, 8], strides = [1, 1, 1]} : vector<4x32x8xf32> to vector<1x32x8xf32>
    %59 = vector.shape_cast %58 : vector<1x32x8xf32> to vector<32x8xf32>
    %cst_31 = arith.constant dense<0.000000e+00> : vector<8x8xf32>
    %60 = tpu.matmul %3, %59, %cst_31 {dimension_numbers = #tpu.dot_dimension_numbers<[1], [0], [0], [1], [0, 0, 1, 1], [], []>} : vector<8x32xf32>, vector<32x8xf32>, vector<8x8xf32> -> vector<8x8xf32>
    %61 = vector.extract_strided_slice %9 {offsets = [3, 0, 0], sizes = [1, 32, 8], strides = [1, 1, 1]} : vector<4x32x8xf32> to vector<1x32x8xf32>
    %62 = vector.shape_cast %61 : vector<1x32x8xf32> to vector<32x8xf32>
    %cst_32 = arith.constant dense<0.000000e+00> : vector<8x8xf32>
    %63 = tpu.matmul %3, %62, %cst_32 {dimension_numbers = #tpu.dot_dimension_numbers<[1], [0], [0], [1], [0, 0, 1, 1], [], []>} : vector<8x32xf32>, vector<32x8xf32>, vector<8x8xf32> -> vector<8x8xf32>
    %64 = vector.shape_cast %54 : vector<8x8xf32> to vector<1x8x8xf32>
    %65 = vector.shape_cast %57 : vector<8x8xf32> to vector<1x8x8xf32>
    %66 = vector.shape_cast %60 : vector<8x8xf32> to vector<1x8x8xf32>
    %67 = vector.shape_cast %63 : vector<8x8xf32> to vector<1x8x8xf32>
    %68 = tpu.concatenate %64, %65, %66, %67 in 0 : vector<1x8x8xf32>, vector<1x8x8xf32>, vector<1x8x8xf32>, vector<1x8x8xf32> -> vector<4x8x8xf32>
    %c0_33 = arith.constant 0 : index
    %c0_34 = arith.constant 0 : index
    %c0_35 = arith.constant 0 : index
    %c0_36 = arith.constant 0 : index
    %69 = vector.load %arg7[%c0_33, %c0_34, %c0_35, %c0_36] : memref<1x4x1x8xf32, #tpu.memory_space<vmem>>, vector<1x4x1x8xf32>
    %70 = vector.shape_cast %69 : vector<1x4x1x8xf32> to vector<4x1x8xf32>
    %71 = vector.broadcast %70 : vector<4x1x8xf32> to vector<4x8x8xf32>
    %72 = arith.addf %68, %71 : vector<4x8x8xf32>
    "tpu.trace_start"() <{level = 10 : i32, message = "hqd,hkd->hqk"}> : () -> ()
    %cst_37 = arith.constant dense<0.000000e+00> : vector<4x8x8xf32>
    %73 = tpu.matmul %30, %51, %cst_37 {dimension_numbers = #tpu.dot_dimension_numbers<[2], [2], [1], [1], [0, 0, 0, 1, 1, 1], [0], [0]>} : vector<4x8x8xf32>, vector<4x8x8xf32>, vector<4x8x8xf32> -> vector<4x8x8xf32>
    "tpu.trace_stop"() : () -> ()
    %cst_38 = arith.constant 0.353553385 : f32
    %74 = vector.broadcast %cst_38 : f32 to vector<4x8x8xf32>
    %75 = arith.mulf %73, %74 : vector<4x8x8xf32>
    %cst_39 = arith.constant dense<0xFF800000> : vector<4x8xf32>
    %76 = vector.multi_reduction <maximumf>, %75, %cst_39 [2] : vector<4x8x8xf32> to vector<4x8xf32>
    %77 = vector.shape_cast %76 : vector<4x8xf32> to vector<4x8x1xf32>
    %78 = vector.broadcast %77 : vector<4x8x1xf32> to vector<4x8x8xf32>
    %79 = arith.subf %75, %78 : vector<4x8x8xf32>
    %80 = math.exp %79 : vector<4x8x8xf32>
    %cst_40 = arith.constant dense<0.000000e+00> : vector<4x8xf32>
    %81 = vector.multi_reduction <add>, %80, %cst_40 [2] : vector<4x8x8xf32> to vector<4x8xf32>
    %82 = vector.shape_cast %81 : vector<4x8xf32> to vector<4x8x1xf32>
    %83 = tpu.reciprocal %82 {approx = true} : vector<4x8x1xf32> -> vector<4x8x1xf32>
    %84 = vector.broadcast %83 : vector<4x8x1xf32> to vector<4x8x8xf32>
    %85 = arith.mulf %80, %84 : vector<4x8x8xf32>
    "tpu.trace_start"() <{level = 10 : i32, message = "hqk,hkd->hqd"}> : () -> ()
    %cst_41 = arith.constant dense<0.000000e+00> : vector<4x8x8xf32>
    %86 = tpu.matmul %85, %72, %cst_41 {dimension_numbers = #tpu.dot_dimension_numbers<[2], [1], [1], [2], [0, 0, 0, 1, 1, 2], [0], [0]>} : vector<4x8x8xf32>, vector<4x8x8xf32>, vector<4x8x8xf32> -> vector<4x8x8xf32>
    "tpu.trace_stop"() : () -> ()
    %c0_42 = arith.constant 0 : index
    %c0_43 = arith.constant 0 : index
    %c0_44 = arith.constant 0 : index
    %c0_45 = arith.constant 0 : index
    %87 = vector.load %arg8[%c0_42, %c0_43, %c0_44, %c0_45] : memref<1x4x8x32xf32, #tpu.memory_space<vmem>>, vector<1x4x8x32xf32>
    %88 = vector.shape_cast %87 : vector<1x4x8x32xf32> to vector<4x8x32xf32>
    "tpu.trace_start"() <{level = 10 : i32, message = "hqd,hde->hqe"}> : () -> ()
    %cst_46 = arith.constant dense<0.000000e+00> : vector<4x8x32xf32>
    %89 = tpu.matmul %86, %88, %cst_46 {dimension_numbers = #tpu.dot_dimension_numbers<[2], [1], [1], [2], [0, 0, 0, 1, 1, 2], [0], [0]>} : vector<4x8x8xf32>, vector<4x8x32xf32>, vector<4x8x32xf32> -> vector<4x8x32xf32>
    "tpu.trace_stop"() : () -> ()
    %c0_47 = arith.constant 0 : index
    %c0_48 = arith.constant 0 : index
    %c0_49 = arith.constant 0 : index
    %90 = vector.load %arg9[%c0_47, %c0_48, %c0_49] : memref<1x1x32xf32, #tpu.memory_space<vmem>>, vector<1x1x32xf32>
    %91 = vector.shape_cast %90 : vector<1x1x32xf32> to vector<1x32xf32>
    %92 = vector.extract_strided_slice %89 {offsets = [0, 0, 0], sizes = [1, 8, 32], strides = [1, 1, 1]} : vector<4x8x32xf32> to vector<1x8x32xf32>
    %93 = vector.shape_cast %92 : vector<1x8x32xf32> to vector<8x32xf32>
    %cst_50 = arith.constant 0.000000e+00 : f32
    %94 = vector.broadcast %cst_50 : f32 to vector<8x32xf32>
    %95 = arith.addf %94, %93 : vector<8x32xf32>
    %96 = vector.extract_strided_slice %89 {offsets = [1, 0, 0], sizes = [1, 8, 32], strides = [1, 1, 1]} : vector<4x8x32xf32> to vector<1x8x32xf32>
    %97 = vector.shape_cast %96 : vector<1x8x32xf32> to vector<8x32xf32>
    %98 = arith.addf %95, %97 : vector<8x32xf32>
    %99 = vector.extract_strided_slice %89 {offsets = [2, 0, 0], sizes = [1, 8, 32], strides = [1, 1, 1]} : vector<4x8x32xf32> to vector<1x8x32xf32>
    %100 = vector.shape_cast %99 : vector<1x8x32xf32> to vector<8x32xf32>
    %101 = arith.addf %98, %100 : vector<8x32xf32>
    %102 = vector.extract_strided_slice %89 {offsets = [3, 0, 0], sizes = [1, 8, 32], strides = [1, 1, 1]} : vector<4x8x32xf32> to vector<1x8x32xf32>
    %103 = vector.shape_cast %102 : vector<1x8x32xf32> to vector<8x32xf32>
    %104 = arith.addf %101, %103 : vector<8x32xf32>
    %105 = vector.broadcast %91 : vector<1x32xf32> to vector<8x32xf32>
    %106 = arith.addf %105, %104 : vector<8x32xf32>
    %107 = arith.addf %3, %106 : vector<8x32xf32>
    %c0_51 = arith.constant 0 : index
    %c0_52 = arith.constant 0 : index
    %c0_53 = arith.constant 0 : index
    %108 = vector.load %arg10[%c0_51, %c0_52, %c0_53] : memref<1x1x32xf32, #tpu.memory_space<vmem>>, vector<1x1x32xf32>
    %109 = vector.shape_cast %108 : vector<1x1x32xf32> to vector<1x32xf32>
    %c0_54 = arith.constant 0 : index
    %c0_55 = arith.constant 0 : index
    %c0_56 = arith.constant 0 : index
    %110 = vector.load %arg11[%c0_54, %c0_55, %c0_56] : memref<1x1x32xf32, #tpu.memory_space<vmem>>, vector<1x1x32xf32>
    %111 = vector.shape_cast %110 : vector<1x1x32xf32> to vector<1x32xf32>
    %cst_57 = arith.constant dense<0.000000e+00> : vector<8xf32>
    %112 = vector.multi_reduction <add>, %107, %cst_57 [1] : vector<8x32xf32> to vector<8xf32>
    %113 = vector.shape_cast %112 : vector<8xf32> to vector<8x1xf32>
    %cst_58 = arith.constant 3.200000e+01 : f32
    %114 = vector.broadcast %cst_58 : f32 to vector<8x1xf32>
    %115 = arith.divf %113, %114 : vector<8x1xf32>
    %116 = vector.broadcast %115 : vector<8x1xf32> to vector<8x32xf32>
    %117 = arith.subf %107, %116 : vector<8x32xf32>
    %118 = arith.mulf %117, %117 : vector<8x32xf32>
    %cst_59 = arith.constant dense<0.000000e+00> : vector<8xf32>
    %119 = vector.multi_reduction <add>, %118, %cst_59 [1] : vector<8x32xf32> to vector<8xf32>
    %120 = vector.shape_cast %119 : vector<8xf32> to vector<8x1xf32>
    %cst_60 = arith.constant 3.200000e+01 : f32
    %121 = vector.broadcast %cst_60 : f32 to vector<8x1xf32>
    %122 = arith.divf %120, %121 : vector<8x1xf32>
    %123 = vector.broadcast %115 : vector<8x1xf32> to vector<8x32xf32>
    %124 = arith.subf %107, %123 : vector<8x32xf32>
    %cst_61 = arith.constant 9.99999974E-6 : f32
    %125 = vector.broadcast %cst_61 : f32 to vector<8x1xf32>
    %126 = arith.addf %122, %125 : vector<8x1xf32>
    %127 = math.rsqrt %126 : vector<8x1xf32>
    %128 = vector.broadcast %127 : vector<8x1xf32> to vector<8x32xf32>
    %129 = arith.mulf %124, %128 : vector<8x32xf32>
    %130 = vector.broadcast %109 : vector<1x32xf32> to vector<8x32xf32>
    %131 = arith.mulf %129, %130 : vector<8x32xf32>
    %132 = vector.broadcast %111 : vector<1x32xf32> to vector<8x32xf32>
    %133 = arith.addf %131, %132 : vector<8x32xf32>
    %134 = arith.truncf %133 : vector<8x32xf32> to vector<8x32xbf16>
    %c0_62 = arith.constant 0 : index
    %c0_63 = arith.constant 0 : index
    %c0_64 = arith.constant 0 : index
    %135 = vector.load %arg14[%c0_62, %c0_63, %c0_64] : memref<1x32x2048xbf16, #tpu.memory_space<vmem>>, vector<1x32x2048xbf16>
    %136 = vector.shape_cast %135 : vector<1x32x2048xbf16> to vector<32x2048xbf16>
    %cst_65 = arith.constant dense<0.000000e+00> : vector<8x2048xf32>
    %137 = tpu.matmul %134, %136, %cst_65 {dimension_numbers = #tpu.dot_dimension_numbers<[1], [0], [0], [1], [0, 0, 1, 1], [], []>} : vector<8x32xbf16>, vector<32x2048xbf16>, vector<8x2048xf32> -> vector<8x2048xf32>
    %c0_66 = arith.constant 0 : index
    %c0_67 = arith.constant 0 : index
    %c0_68 = arith.constant 0 : index
    %138 = vector.load %arg15[%c0_66, %c0_67, %c0_68] : memref<1x1x2048xf32, #tpu.memory_space<vmem>>, vector<1x1x2048xf32>
    %139 = vector.shape_cast %138 : vector<1x1x2048xf32> to vector<1x2048xf32>
    %140 = vector.broadcast %139 : vector<1x2048xf32> to vector<8x2048xf32>
    %141 = arith.addf %137, %140 : vector<8x2048xf32>
    %cst_69 = arith.constant 0.000000e+00 : f32
    %142 = vector.broadcast %cst_69 : f32 to vector<8x2048xf32>
    %143 = arith.maximumf %141, %142 : vector<8x2048xf32>
    %144 = arith.truncf %143 : vector<8x2048xf32> to vector<8x2048xbf16>
    %c0_70 = arith.constant 0 : index
    %c0_71 = arith.constant 0 : index
    %c0_72 = arith.constant 0 : index
    %145 = vector.load %arg16[%c0_70, %c0_71, %c0_72] : memref<1x2048x32xbf16, #tpu.memory_space<vmem>>, vector<1x2048x32xbf16>
    %146 = vector.shape_cast %145 : vector<1x2048x32xbf16> to vector<2048x32xbf16>
    %cst_73 = arith.constant dense<0.000000e+00> : vector<8x32xf32>
    %147 = tpu.matmul %144, %146, %cst_73 {dimension_numbers = #tpu.dot_dimension_numbers<[1], [0], [0], [1], [0, 0, 1, 1], [], []>} : vector<8x2048xbf16>, vector<2048x32xbf16>, vector<8x32xf32> -> vector<8x32xf32>
    %c0_74 = arith.constant 0 : index
    %c0_75 = arith.constant 0 : index
    %c0_76 = arith.constant 0 : index
    %148 = vector.load %arg17[%c0_74, %c0_75, %c0_76] : memref<1x1x32xf32, #tpu.memory_space<vmem>>, vector<1x1x32xf32>
    %149 = vector.shape_cast %148 : vector<1x1x32xf32> to vector<1x32xf32>
    %150 = vector.broadcast %149 : vector<1x32xf32> to vector<8x32xf32>
    %151 = arith.addf %147, %150 : vector<8x32xf32>
    %152 = arith.addf %133, %151 : vector<8x32xf32>
    %c0_77 = arith.constant 0 : index
    %c0_78 = arith.constant 0 : index
    %c0_79 = arith.constant 0 : index
    %153 = vector.load %arg12[%c0_77, %c0_78, %c0_79] : memref<1x1x32xf32, #tpu.memory_space<vmem>>, vector<1x1x32xf32>
    %154 = vector.shape_cast %153 : vector<1x1x32xf32> to vector<1x32xf32>
    %c0_80 = arith.constant 0 : index
    %c0_81 = arith.constant 0 : index
    %c0_82 = arith.constant 0 : index
    %155 = vector.load %arg13[%c0_80, %c0_81, %c0_82] : memref<1x1x32xf32, #tpu.memory_space<vmem>>, vector<1x1x32xf32>
    %156 = vector.shape_cast %155 : vector<1x1x32xf32> to vector<1x32xf32>
    %cst_83 = arith.constant dense<0.000000e+00> : vector<8xf32>
    %157 = vector.multi_reduction <add>, %152, %cst_83 [1] : vector<8x32xf32> to vector<8xf32>
    %158 = vector.shape_cast %157 : vector<8xf32> to vector<8x1xf32>
    %cst_84 = arith.constant 3.200000e+01 : f32
    %159 = vector.broadcast %cst_84 : f32 to vector<8x1xf32>
    %160 = arith.divf %158, %159 : vector<8x1xf32>
    %161 = vector.broadcast %160 : vector<8x1xf32> to vector<8x32xf32>
    %162 = arith.subf %152, %161 : vector<8x32xf32>
    %163 = arith.mulf %162, %162 : vector<8x32xf32>
    %cst_85 = arith.constant dense<0.000000e+00> : vector<8xf32>
    %164 = vector.multi_reduction <add>, %163, %cst_85 [1] : vector<8x32xf32> to vector<8xf32>
    %165 = vector.shape_cast %164 : vector<8xf32> to vector<8x1xf32>
    %cst_86 = arith.constant 3.200000e+01 : f32
    %166 = vector.broadcast %cst_86 : f32 to vector<8x1xf32>
    %167 = arith.divf %165, %166 : vector<8x1xf32>
    %168 = vector.broadcast %160 : vector<8x1xf32> to vector<8x32xf32>
    %169 = arith.subf %152, %168 : vector<8x32xf32>
    %cst_87 = arith.constant 9.99999974E-6 : f32
    %170 = vector.broadcast %cst_87 : f32 to vector<8x1xf32>
    %171 = arith.addf %167, %170 : vector<8x1xf32>
    %172 = math.rsqrt %171 : vector<8x1xf32>
    %173 = vector.broadcast %172 : vector<8x1xf32> to vector<8x32xf32>
    %174 = arith.mulf %169, %173 : vector<8x32xf32>
    %175 = vector.broadcast %154 : vector<1x32xf32> to vector<8x32xf32>
    %176 = arith.mulf %174, %175 : vector<8x32xf32>
    %177 = vector.broadcast %156 : vector<1x32xf32> to vector<8x32xf32>
    %178 = arith.addf %176, %177 : vector<8x32xf32>
    %c0_88 = arith.constant 0 : index
    %c0_89 = arith.constant 0 : index
    %179 = vector.load %arg21[%c0_88, %c0_89] : memref<8x32xf32, #tpu.memory_space<vmem>>, vector<8x32xf32>
    tpu.vector_store %arg21[%c0_88, %c0_89], %178 {strides = array<i32>} : memref<8x32xf32, #tpu.memory_space<vmem>>, vector<8x32xf32>,
    %c1_i32 = arith.constant 1 : i32
    %180 = arith.cmpi eq, %arg0, %c1_i32 : i32
    %181 = arith.extui %180 : i1 to i32
    %c0_i32_90 = arith.constant 0 : i32
    %182 = arith.cmpi ne, %181, %c0_i32_90 : i32
    scf.if %182 {
      %c0_91 = arith.constant 0 : index
      %c0_92 = arith.constant 0 : index
      %183 = vector.load %arg18[%c0_91, %c0_92] : memref<32x4xf32, #tpu.memory_space<vmem>>, vector<32x4xf32>
      %cst_93 = arith.constant dense<0.000000e+00> : vector<8x4xf32>
      %184 = tpu.matmul %178, %183, %cst_93 {dimension_numbers = #tpu.dot_dimension_numbers<[1], [0], [0], [1], [0, 0, 1, 1], [], []>} : vector<8x32xf32>, vector<32x4xf32>, vector<8x4xf32> -> vector<8x4xf32>
      %c0_94 = arith.constant 0 : index
      %c0_95 = arith.constant 0 : index
      %185 = vector.load %arg19[%c0_94, %c0_95] : memref<1x4xf32, #tpu.memory_space<vmem>>, vector<1x4xf32>
      %186 = vector.broadcast %185 : vector<1x4xf32> to vector<8x4xf32>
      %187 = arith.addf %184, %186 : vector<8x4xf32>
      %c0_96 = arith.constant 0 : index
      %c0_97 = arith.constant 0 : index
      %188 = vector.load %arg20[%c0_96, %c0_97] : memref<8x4xf32, #tpu.memory_space<vmem>>, vector<8x4xf32>
      tpu.vector_store %arg20[%c0_96, %c0_97], %187 {strides = array<i32>} : memref<8x4xf32, #tpu.memory_space<vmem>>, vector<8x4xf32>,
    } else {
    }
    return
  }
  func.func @transform_0(%arg0: i32) -> (i32, i32) {
    %c0_i32 = arith.constant 0 : i32
    %c0_i32_0 = arith.constant 0 : i32
    %c0_i32_1 = arith.constant 0 : i32
    return %c0_i32, %c0_i32_0 : i32, i32
  }
  func.func @transform_1(%arg0: i32) -> (i32, i32, i32, i32) {
    %c0_i32 = arith.constant 0 : i32
    %c0_i32_0 = arith.constant 0 : i32
    %c0_i32_1 = arith.constant 0 : i32
    %c0_i32_2 = arith.constant 0 : i32
    return %arg0, %c0_i32, %c0_i32_0, %c0_i32_1 : i32, i32, i32, i32
  }
  func.func @transform_2(%arg0: i32) -> (i32, i32, i32, i32) {
    %c0_i32 = arith.constant 0 : i32
    %c0_i32_0 = arith.constant 0 : i32
    %c0_i32_1 = arith.constant 0 : i32
    %c0_i32_2 = arith.constant 0 : i32
    return %arg0, %c0_i32, %c0_i32_0, %c0_i32_1 : i32, i32, i32, i32
  }
  func.func @transform_3(%arg0: i32) -> (i32, i32, i32, i32) {
    %c0_i32 = arith.constant 0 : i32
    %c0_i32_0 = arith.constant 0 : i32
    %c0_i32_1 = arith.constant 0 : i32
    %c0_i32_2 = arith.constant 0 : i32
    return %arg0, %c0_i32, %c0_i32_0, %c0_i32_1 : i32, i32, i32, i32
  }
  func.func @transform_4(%arg0: i32) -> (i32, i32, i32, i32) {
    %c0_i32 = arith.constant 0 : i32
    %c0_i32_0 = arith.constant 0 : i32
    %c0_i32_1 = arith.constant 0 : i32
    %c0_i32_2 = arith.constant 0 : i32
    return %arg0, %c0_i32, %c0_i32_0, %c0_i32_1 : i32, i32, i32, i32
  }
  func.func @transform_5(%arg0: i32) -> (i32, i32, i32, i32) {
    %c0_i32 = arith.constant 0 : i32
    %c0_i32_0 = arith.constant 0 : i32
    %c0_i32_1 = arith.constant 0 : i32
    %c0_i32_2 = arith.constant 0 : i32
    return %arg0, %c0_i32, %c0_i32_0, %c0_i32_1 : i32, i32, i32, i32
  }
  func.func @transform_6(%arg0: i32) -> (i32, i32, i32, i32) {
    %c0_i32 = arith.constant 0 : i32
    %c0_i32_0 = arith.constant 0 : i32
    %c0_i32_1 = arith.constant 0 : i32
    %c0_i32_2 = arith.constant 0 : i32
    return %arg0, %c0_i32, %c0_i32_0, %c0_i32_1 : i32, i32, i32, i32
  }
  func.func @transform_7(%arg0: i32) -> (i32, i32, i32, i32) {
    %c0_i32 = arith.constant 0 : i32
    %c0_i32_0 = arith.constant 0 : i32
    %c0_i32_1 = arith.constant 0 : i32
    %c0_i32_2 = arith.constant 0 : i32
    return %arg0, %c0_i32, %c0_i32_0, %c0_i32_1 : i32, i32, i32, i32
  }
  func.func @transform_8(%arg0: i32) -> (i32, i32, i32) {
    %c0_i32 = arith.constant 0 : i32
    %c0_i32_0 = arith.constant 0 : i32
    %c0_i32_1 = arith.constant 0 : i32
    return %arg0, %c0_i32, %c0_i32_0 : i32, i32, i32
  }
  func.func @transform_9(%arg0: i32) -> (i32, i32, i32) {
    %c0_i32 = arith.constant 0 : i32
    %c0_i32_0 = arith.constant 0 : i32
    %c0_i32_1 = arith.constant 0 : i32
    return %arg0, %c0_i32, %c0_i32_0 : i32, i32, i32
  }
  func.func @transform_10(%arg0: i32) -> (i32, i32, i32) {
    %c0_i32 = arith.constant 0 : i32
    %c0_i32_0 = arith.constant 0 : i32
    %c0_i32_1 = arith.constant 0 : i32
    return %arg0, %c0_i32, %c0_i32_0 : i32, i32, i32
  }
  func.func @transform_11(%arg0: i32) -> (i32, i32, i32) {
    %c0_i32 = arith.constant 0 : i32
    %c0_i32_0 = arith.constant 0 : i32
    %c0_i32_1 = arith.constant 0 : i32
    return %arg0, %c0_i32, %c0_i32_0 : i32, i32, i32
  }
  func.func @transform_12(%arg0: i32) -> (i32, i32, i32) {
    %c0_i32 = arith.constant 0 : i32
    %c0_i32_0 = arith.constant 0 : i32
    %c0_i32_1 = arith.constant 0 : i32
    return %arg0, %c0_i32, %c0_i32_0 : i32, i32, i32
  }
  func.func @transform_13(%arg0: i32) -> (i32, i32, i32) {
    %c0_i32 = arith.constant 0 : i32
    %c0_i32_0 = arith.constant 0 : i32
    %c0_i32_1 = arith.constant 0 : i32
    return %arg0, %c0_i32, %c0_i32_0 : i32, i32, i32
  }
  func.func @transform_14(%arg0: i32) -> (i32, i32, i32) {
    %c0_i32 = arith.constant 0 : i32
    %c0_i32_0 = arith.constant 0 : i32
    %c0_i32_1 = arith.constant 0 : i32
    return %arg0, %c0_i32, %c0_i32_0 : i32, i32, i32
  }
  func.func @transform_15(%arg0: i32) -> (i32, i32, i32) {
    %c0_i32 = arith.constant 0 : i32
    %c0_i32_0 = arith.constant 0 : i32
    %c0_i32_1 = arith.constant 0 : i32
    return %arg0, %c0_i32, %c0_i32_0 : i32, i32, i32
  }
  func.func @transform_16(%arg0: i32) -> (i32, i32, i32) {
    %c0_i32 = arith.constant 0 : i32
    %c0_i32_0 = arith.constant 0 : i32
    %c0_i32_1 = arith.constant 0 : i32
    return %arg0, %c0_i32, %c0_i32_0 : i32, i32, i32
  }
  func.func @transform_17(%arg0: i32) -> (i32, i32) {
    %c0_i32 = arith.constant 0 : i32
    %c0_i32_0 = arith.constant 0 : i32
    %c0_i32_1 = arith.constant 0 : i32
    return %c0_i32, %c0_i32_0 : i32, i32
  }
  func.func @transform_18(%arg0: i32) -> (i32, i32) {
    %c0_i32 = arith.constant 0 : i32
    %c0_i32_0 = arith.constant 0 : i32
    %c0_i32_1 = arith.constant 0 : i32
    return %c0_i32, %c0_i32_0 : i32, i32
  }
  func.func @transform_19(%arg0: i32) -> (i32, i32) {
    %c0_i32 = arith.constant 0 : i32
    %c0_i32_0 = arith.constant 0 : i32
    %c0_i32_1 = arith.constant 0 : i32
    return %c0_i32, %c0_i32_0 : i32, i32
  }
}

</mosaic_0001>

<bundles_post_ra>
// kernel: tft_forward.1
= control target key start
LH: loop header
LB: loop body
LE: loop exit
PB: predicated region body
PF: predicated region fallthrough
CT: control target
= control target key end

     0   :  { %s5129_s0 = inlined_call_operand.vmem [shape: f32[8,32], index: 0, kind: input, shape index: {}]   ;;  %s5130_s1 = inlined_call_operand.vmem [shape: f32[2,4,32,8], index: 1, kind: input, shape index: {}]   ;;  %s5131_s2 = inlined_call_operand.vmem [shape: f32[2,4,32,8], index: 2, kind: input, shape index: {}]   ;;  %s5132_s3 = inlined_call_operand.vmem [shape: f32[2,4,32,8], index: 3, kind: input, shape index: {}]   ;;  %s5133_s4 = inlined_call_operand.vmem [shape: f32[2,4,1,8], index: 4, kind: input, shape index: {}]   ;;  %s5134_s5 = inlined_call_operand.vmem [shape: f32[2,4,1,8], index: 5, kind: input, shape index: {}]   ;;  %s5135_s6 = inlined_call_operand.vmem [shape: f32[2,4,1,8], index: 6, kind: input, shape index: {}]   ;;  %s5136_s7 = inlined_call_operand.vmem [shape: f32[2,4,8,32], index: 7, kind: input, shape index: {}]   ;;  %s5137_s8 = inlined_call_operand.vmem [shape: f32[2,1,32], index: 8, kind: input, shape index: {}]   ;;  %s5138_s9 = inlined_call_operand.vmem [shape: f32[2,1,32], index: 9, kind: input, shape index: {}]   ;;  %s5139_s10 = inlined_call_operand.vmem [shape: f32[2,1,32], index: 10, kind: input, shape index: {}]   ;;  %s5140_s11 = inlined_call_operand.vmem [shape: f32[2,1,32], index: 11, kind: input, shape index: {}]   ;;  %s5141_s12 = inlined_call_operand.vmem [shape: f32[2,1,32], index: 12, kind: input, shape index: {}]   ;;  %s5142_s13 = inlined_call_operand.vmem [shape: bf16[2,32,2048], index: 13, kind: input, shape index: {}]   ;;  %s5143_s14 = inlined_call_operand.vmem [shape: f32[2,1,2048], index: 14, kind: input, shape index: {}]   ;;  %s5144_s15 = inlined_call_operand.vmem [shape: bf16[2,2048,32], index: 15, kind: input, shape index: {}]   ;;  %s5145_s16 = inlined_call_operand.vmem [shape: f32[2,1,32], index: 16, kind: input, shape index: {}]   ;;  %s5146_s17 = inlined_call_operand.vmem [shape: f32[32,4], index: 17, kind: input, shape index: {}]   ;;  %s5147_s18 = inlined_call_operand.vmem [shape: f32[1,4], index: 18, kind: input, shape index: {}]   ;;  %s5148_s19 = inlined_call_operand.vmem [shape: f32[8,4], index: 19, kind: output, shape index: {}]  }
   0x1   :  { %5155 = sst [smem:[#allocation8_spill]] %s5129_s0  ;;  %s4594_s0 = smov 0  }
   0x2   :  { %5156 = sst [smem:[#allocation9_spill]] %s5130_s1 }
   0x3   :  { %5157 = sst [smem:[#allocation10_spill]] %s5131_s2 }
   0x4   :  { %5158 = sst [smem:[#allocation11_spill]] %s5132_s3 }
   0x5   :  { %5159 = sst [smem:[#allocation12_spill]] %s5133_s4 }
   0x6   :  { %5160 = sst [smem:[#allocation13_spill]] %s5134_s5 }
   0x7   :  { %5161 = sst [smem:[#allocation14_spill]] %s5135_s6 }
   0x8   :  { %5162 = sst [smem:[#allocation15_spill]] %s5146_s17 }
   0x9   :  { %5163 = sst [smem:[#allocation16_spill]] %s5147_s18 }
   0xa   :  { %5164 = sst [smem:[#allocation17_spill]] %s5148_s19 }
   0xb LB: > { %5165 = sst [smem:[#allocation3_spill]] %s4491_s0  ;;  %s4600_s30 = sadd.s32 4294967295, %s4491_s0   ;;  %s4491_s0 = sphi %s4594_s0, %s29_s0  }
   0xc   : > { %5166 = sst [smem:[#allocation4_spill]] %s4600_s30  ;;  %p3563_p0 = scmp.ge.s32.totalorder %s4491_s0, 1 }
   0xd   : > { %p666_p1 = scmp.lt.s32.totalorder %s4491_s0, 3 }
   0xf   : > { %p667_p2 = pnand %p3563_p0, %p666_p1 }
  0x11   : > { %670 = sbr.rel (%p667_p2) target bundleno = 1891 (0x763), region = 96 }
  0x16   : > { %p776_p3 = scmp.lt.s32.totalorder %s4600_s30, 1  ;;  %s5167_s23 = sld [smem:[#allocation9_spill]] }
  0x17   : > { %s5168_s26 = sld [smem:[#allocation10_spill]] }
  0x18   : > { %s4606_s20 = scalar_select %p776_p3, %s4600_s30, 1 }
  0x19   : > { %s5169_s0 = sld [smem:[#allocation11_spill]] }
  0x1a   : > { %s4269_s21 = sshll.u32 %s4606_s20, 7  ;;  %s3570_s1 = sshll.u32 %s4606_s20, 2 }
  0x1b   : > { %s5171_s4 = sld [smem:[#allocation12_spill]]  ;;  %s4272_s28 = sshll.u32 %s4606_s20, 5 }
  0x1c   : > { %s4613_s24 = scalar_lea.vmem %s5167_s23, %s4269_s21  ;;  %s5173_s5 = sld [smem:[#allocation13_spill]] }
  0x1d   : > { %s4618_s27 = scalar_lea.vmem %s5168_s26, %s4269_s21  ;;  %s5174_s6 = sld [smem:[#allocation14_spill]] }
  0x1e   : > { %s4648_s18 = scalar_lea.vmem %s5136_s7, %s4272_s28 }
  0x1f   : > { %s4623_s19 = scalar_lea.vmem %s5169_s0, %s4269_s21  ;;  %s4273_s21 = sshll.u32 %s4606_s20, 8 }
  0x20   : > { %5170 = sst [smem:[#allocation5_spill]] %s4623_s19  ;;  %s4670_s17 = scalar_lea.vmem %s5142_s13, %s4273_s21 }
  0x21   : > { %s4628_s30 = scalar_lea.vmem %s5171_s4, %s3570_s1  ;;  %s3577_s4 = sshll.u32 %s4606_s20, 4 }
  0x22   : > { %5172 = sst [smem:[#allocation6_spill]] %s4628_s30  ;;  %s4633_s23 = scalar_lea.vmem %s5173_s5, %s3570_s1 }
  0x23   : > { %s4638_s26 = scalar_lea.vmem %s5174_s6, %s3570_s1  ;;  %s4676_s5 = scalar_lea.vmem %s5143_s14, %s3577_s4 }
  0x24   : > { %5175 = sst [smem:[#allocation7_spill]] %s4638_s26  ;;  %s4274_s30 = sshll.u32 %s4606_s20, 10 }
  0x25   : > { %s4682_s3 = scalar_lea.vmem %s5144_s15, %s4274_s30  ;;  %s839_s0 = scalar_lea.vmem %s5145_s16, %s4606_s20 }
  0x26   : > { %s5176_s6 = sld [smem:[#allocation4_spill]] }
  0x2c   : > { %p3580_p4 = scmp.ne.s32.totalorder %s5176_s6, 0 }
  0x2d   : > { %s5177_s28 = sld [smem:[#allocation8_spill]] (!%p3580_p4) }
  0x2e   : > { %844 = sbr.rel (%p3580_p4) target bundleno = 53 (0x35), region = 100 }
  0x33   : > { %v845_v0 = vld [vmem:[%s5177_s28] sm:$0xff]  ;;  %vm846_vm0 = vcmask 261120  }
  0x34   : > { %847 = vst.msk [vmem:[#allocation2] sm:$0xff] %vm846_vm0, %v845_v0 }
  0x35 PF: > { %v852_v1 = vld [vmem:[%s4613_s24 + $0x18] sm:$0xff]  ;;  %v851_v4 = vld [vmem:[%s4613_s24 + $0x10] sm:$0xff]  ;;  %v850_v7 = vld [vmem:[%s4613_s24 + $0x8] sm:$0xff]  ;;  %vm897_vm1 = vcmask 261120   ;;  %s5178_s6 = sld [smem:[#allocation5_spill]]  ;;  %vm1201_vm2 = vcmask 64512   ;;  %s5181_s2 = scalar_lea.vmem %s5137_s8, %s4606_s20 }
  0x36   : > { %v860_v2 = vld [vmem:[%s4613_s24 + $0x58] sm:$0xff]  ;;  %913 = vmatpush.msra.mxu0 %v852_v1  ;;  %v859_v5 = vld [vmem:[%s4613_s24 + $0x50] sm:$0xff]  ;;  %v858_v8 = vld [vmem:[%s4613_s24 + $0x48] sm:$0xff]  ;;  %s5182_s22 = scalar_lea.vmem %s5138_s9, %s4606_s20  ;;  %s5183_s26 = scalar_lea.vmem %s5139_s10, %s4606_s20 }
  0x37   : > { %v864_v3 = vld [vmem:[%s4613_s24 + $0x78] sm:$0xff]  ;;  %953 = vmatpush.msra.mxu2 %v860_v2  ;;  %v863_v6 = vld [vmem:[%s4613_s24 + $0x70] sm:$0xff]  ;;  %v862_v9 = vld [vmem:[%s4613_s24 + $0x68] sm:$0xff]  ;;  %s5184_s29 = scalar_lea.vmem %s5140_s11, %s4606_s20  ;;  %s5185_s28 = scalar_lea.vmem %s5141_s12, %s4606_s20 }
  0x38   : > { %973 = vmatpush.msra.mxu3 %v864_v3  ;;  %914 = vmatpush.msra.mxu0 %v851_v4  ;;  %v849_v10 = vld [vmem:[%s4613_s24] sm:$0xff]  ;;  %v856_v12 = vld [vmem:[%s4613_s24 + $0x38] sm:$0xff]  ;;  %v855_v18 = vld [vmem:[%s4613_s24 + $0x30] sm:$0xff] }
  0x39   : > { %954 = vmatpush.msra.mxu2 %v859_v5  ;;  %v857_v11 = vld [vmem:[%s4613_s24 + $0x40] sm:$0xff]  ;;  %933 = vmatpush.msra.mxu1 %v856_v12  ;;  %v868_v15 = vld [vmem:[%s4618_s27 + $0x18] sm:$0xff]  ;;  %v867_v19 = vld [vmem:[%s4618_s27 + $0x10] sm:$0xff] }
  0x3a   : > { %974 = vmatpush.msra.mxu3 %v863_v6  ;;  %915 = vmatpush.msra.mxu0 %v850_v7  ;;  %v861_v13 = vld [vmem:[%s4613_s24 + $0x60] sm:$0xff]  ;;  %v876_v16 = vld [vmem:[%s4618_s27 + $0x58] sm:$0xff]  ;;  %v875_v20 = vld [vmem:[%s4618_s27 + $0x50] sm:$0xff] }
  0x3b   : > { %955 = vmatpush.msra.mxu2 %v858_v8  ;;  %v4705_v14 = vld [vmem:[#allocation2] sm:$0xff]  ;;  %v880_v17 = vld [vmem:[%s4618_s27 + $0x78] sm:$0xff]  ;;  %v879_v21 = vld [vmem:[%s4618_s27 + $0x70] sm:$0xff]  ;;  %934 = vmatpush.msra.mxu1 %v855_v18 }
  0x3c   : > { %975 = vmatpush.msra.mxu3 %v862_v9  ;;  %916 = vmatpush.msra.mxu0 %v849_v10  ;;  %v854_v22 = vld [vmem:[%s4613_s24 + $0x28] sm:$0xff]  ;;  %v853_v26 = vld [vmem:[%s4613_s24 + $0x20] sm:$0xff]  ;;  %v872_v30 = vld [vmem:[%s4618_s27 + $0x38] sm:$0xff]  ;;  %s5179_s24 = sld [smem:[#allocation6_spill]] }
  0x3d   : > { %956 = vmatpush.msra.mxu2 %v857_v11  ;;  %3581 = vmatmul.msk.f32.vlgmr.msra.gmra.mxu0 %vm897_vm1, %v4705_v14  ;;  %v866_v23 = vld [vmem:[%s4618_s27 + $0x8] sm:$0xff]  ;;  %v865_v27 = vld [vmem:[%s4618_s27] sm:$0xff]  ;;  %v884_v31 = vld [vmem:[%s5178_s6 + $0x18] sm:$0xff] }
  0x3e   : > { %976 = vmatpush.msra.mxu3 %v861_v13  ;;  %3583 = vmatmul.msk.f32.vlgmr.msra.gmra.mxu2 %vm897_vm1, %v4705_v14  ;;  %v874_v24 = vld [vmem:[%s4618_s27 + $0x48] sm:$0xff]  ;;  %v873_v28 = vld [vmem:[%s4618_s27 + $0x40] sm:$0xff]  ;;  %v871_v32 = vld [vmem:[%s4618_s27 + $0x30] sm:$0xff] }
  0x3f   : > { %3584 = vmatmul.msk.f32.vlgmr.msra.gmra.mxu3 %vm897_vm1, %v4705_v14  ;;  %1013 = vmatpush.msrb.mxu0 %v868_v15  ;;  %v878_v25 = vld [vmem:[%s4618_s27 + $0x68] sm:$0xff]  ;;  %v877_v29 = vld [vmem:[%s4618_s27 + $0x60] sm:$0xff]  ;;  %v883_v35 = vld [vmem:[%s5178_s6 + $0x10] sm:$0xff] }
  0x40   : > { %1053 = vmatpush.msrb.mxu2 %v876_v16  ;;  %1073 = vmatpush.msrb.mxu3 %v880_v17  ;;  %v870_v33 = vld [vmem:[%s4618_s27 + $0x28] sm:$0xff]  ;;  %v869_v34 = vld [vmem:[%s4618_s27 + $0x20] sm:$0xff]  ;;  %v892_v37 = vld [vmem:[%s5178_s6 + $0x58] sm:$0xff]  ;;  %s5180_s27 = sld [smem:[#allocation7_spill]] }
  0x41   : > { %1014 = vmatpush.msrb.mxu0 %v867_v19  ;;  %935 = vmatpush.msra.mxu1 %v854_v22  ;;  %v882_v36 = vld [vmem:[%s5178_s6 + $0x8] sm:$0xff]  ;;  %v896_v38 = vld [vmem:[%s5178_s6 + $0x78] sm:$0xff]  ;;  %v881_v39 = vld [vmem:[%s5178_s6] sm:$0xff] }
  0x42   : > { %1054 = vmatpush.msrb.mxu2 %v875_v20  ;;  %1074 = vmatpush.msrb.mxu3 %v879_v21  ;;  %v888_v40 = vld [vmem:[%s5178_s6 + $0x38] sm:$0xff]  ;;  %v891_v41 = vld [vmem:[%s5178_s6 + $0x50] sm:$0xff]  ;;  %v890_v44 = vld [vmem:[%s5178_s6 + $0x48] sm:$0xff] }
  0x43   : > { %1015 = vmatpush.msrb.mxu0 %v866_v23  ;;  %936 = vmatpush.msra.mxu1 %v853_v26  ;;  %v895_v42 = vld [vmem:[%s5178_s6 + $0x70] sm:$0xff]  ;;  %v894_v45 = vld [vmem:[%s5178_s6 + $0x68] sm:$0xff]  ;;  %v889_v47 = vld [vmem:[%s5178_s6 + $0x40] sm:$0xff] }
  0x44   : > { %1055 = vmatpush.msrb.mxu2 %v874_v24  ;;  %1075 = vmatpush.msrb.mxu3 %v878_v25  ;;  %v887_v43 = vld [vmem:[%s5178_s6 + $0x30] sm:$0xff]  ;;  %v886_v46 = vld [vmem:[%s5178_s6 + $0x28] sm:$0xff]  ;;  %v893_v48 = vld [vmem:[%s5178_s6 + $0x60] sm:$0xff] }
  0x45   : > { %1016 = vmatpush.msrb.mxu0 %v865_v27  ;;  %3582 = vmatmul.msk.f32.vlgmr.msra.gmra.mxu1 %vm897_vm1, %v4705_v14  ;;  %v885_v49 = vld [vmem:[%s5178_s6 + $0x20] sm:$0xff]  ;;  %s5186_s6 = sld [smem:[#allocation4_spill]] }
  0x46   : > { %1056 = vmatpush.msrb.mxu2 %v873_v28  ;;  %1076 = vmatpush.msrb.mxu3 %v877_v29  ;;  %v4448_v53 = vld [vmem:[%s4633_s23] ss:$0 sm:$0xff]  ;;  %v4449_v59 = vld [vmem:[%s4633_s23 + $0x2] ss:$0 sm:$0xff]  ;;  %v4450_v60 = vld [vmem:[%s4633_s23 + $0x3] ss:$0 sm:$0xff] }
  0x47   : > { %3585 = vmatmul.msk.f32.vlgmr.msrb.gmra.mxu0 %vm897_vm1, %v4705_v14  ;;  %3587 = vmatmul.msk.f32.vlgmr.msrb.gmra.mxu2 %vm897_vm1, %v4705_v14  ;;  %v4444_v54 = vld [vmem:[%s5179_s24] ss:$0 sm:$0xff]  ;;  %v4451_v61 = vld [vmem:[%s4633_s23 + $0x1] ss:$0 sm:$0xff]  ;;  %v4445_v62 = vld [vmem:[%s5179_s24 + $0x2] ss:$0 sm:$0xff] }
  0x48   : > { %3588 = vmatmul.msk.f32.vlgmr.msrb.gmra.mxu3 %vm897_vm1, %v4705_v14  ;;  %1033 = vmatpush.msrb.mxu1 %v872_v30  ;;  %v4447_v63 = vld [vmem:[%s5179_s24 + $0x1] ss:$0 sm:$0xff]  ;;  %v4446_v1 = vld [vmem:[%s5179_s24 + $0x3] ss:$0 sm:$0xff]  ;;  %v4452_v10 = vld [vmem:[%s5180_s27] ss:$0 sm:$0xff] }
  0x49   : > { %1113 = vmatpush.msra.mxu0 %v884_v31  ;;  %1153 = vmatpush.msra.mxu2 %v892_v37  ;;  %v4453_v13 = vld [vmem:[%s5180_s27 + $0x1] ss:$0 sm:$0xff]  ;;  %v4454_v17 = vld [vmem:[%s5180_s27 + $0x2] ss:$0 sm:$0xff]  ;;  %v4455_v18 = vld [vmem:[%s5180_s27 + $0x3] ss:$0 sm:$0xff] }
  0x4a   : > { %1034 = vmatpush.msrb.mxu1 %v871_v32  ;;  %1173 = vmatpush.msra.mxu3 %v896_v38 }
  0x4b   : > { %1114 = vmatpush.msra.mxu0 %v883_v35  ;;  %1154 = vmatpush.msra.mxu2 %v891_v41  ;;  %p4265_p5 = scmp.ne.s32.totalorder %s5186_s6, 1 }
  0x4c   : > { %1035 = vmatpush.msrb.mxu1 %v870_v33  ;;  %1174 = vmatpush.msra.mxu3 %v895_v42  ;;  %s5187_s23 = sld [smem:[#allocation15_spill]] (!%p4265_p5) }
  0x4d   : > { %1115 = vmatpush.msra.mxu0 %v882_v36  ;;  %1155 = vmatpush.msra.mxu2 %v890_v44 }
  0x4e   : > { %1036 = vmatpush.msrb.mxu1 %v869_v34  ;;  %1175 = vmatpush.msra.mxu3 %v894_v45 }
  0x4f   : > { %3586 = vmatmul.msk.f32.vlgmr.msrb.gmra.mxu1 %vm897_vm1, %v4705_v14  ;;  %1116 = vmatpush.msra.mxu0 %v881_v39 }
  0x50   : > { %3589 = vmatmul.msk.f32.vlgmr.msra.gmra.mxu0 %vm897_vm1, %v4705_v14  ;;  %1133 = vmatpush.msra.mxu1 %v888_v40 }
  0x51   : > { %1156 = vmatpush.msra.mxu2 %v889_v47  ;;  %1176 = vmatpush.msra.mxu3 %v893_v48 }
  0x52   : > { %1134 = vmatpush.msra.mxu1 %v887_v43  ;;  %3591 = vmatmul.msk.f32.vlgmr.msra.gmra.mxu2 %vm897_vm1, %v4705_v14 }
  0x53   : > { %3592 = vmatmul.msk.f32.vlgmr.msra.gmra.mxu3 %vm897_vm1, %v4705_v14 }
  0x54   : > { %1135 = vmatpush.msra.mxu1 %v886_v46 }
  0x56   : > { %1136 = vmatpush.msra.mxu1 %v885_v49 }
  0x57   : > { %3590 = vmatmul.msk.f32.vlgmr.msra.gmra.mxu1 %vm897_vm1, %v4705_v14 }
  0xba   : > { %v918_v50 = vpop.f32.mrf.mxu0 }
  0xbb   : > { %v997_v58 = vadd.f32 %v4444_v54, %v918_v50 }
  0xc1   : > { %v958_v51 = vpop.f32.mrf.mxu2 }
  0xc2   : > { %v978_v52 = vpop.f32.mrf.mxu3  ;;  %v938_v55 = vpop.f32.mrf.mxu1  ;;  %v999_v7 = vadd.f32 %v4445_v62, %v958_v51 }
  0xc3   : > { %v998_v8 = vadd.f32 %v4447_v63, %v938_v55  ;;  %v1000_v9 = vadd.f32 %v4446_v1, %v978_v52 }
  0xc4   : > { %v1018_v56 = vpop.f32.mrf.mxu0 }
  0xc5   : > { %v1097_v57 = vadd.f32 %v4448_v53, %v1018_v56 }
  0xc7   : > { %3593 = vmatpush.xpose.msk.msrb.mxu0 %vm1201_vm2, %v1097_v57 }
  0xca   : > { %v1058_v0 = vpop.f32.mrf.mxu2  ;;  %3594 = vmatmul.msk.f32.vlgmr.msrb.gmra.mxu0 %vm1201_vm2, %v997_v58 }
  0xcb   : > { %v1099_v2 = vadd.f32 %v4449_v59, %v1058_v0  ;;  %v1078_v3 = vpop.f32.mrf.mxu3 }
  0xcc   : > { %v1100_v4 = vadd.f32 %v4450_v60, %v1078_v3  ;;  %v1038_v5 = vpop.f32.mrf.mxu1  ;;  %v1446_v3 = vld [vmem:[%s4648_s18] sm:$0xff] }
  0xcd   : > { %v1098_v6 = vadd.f32 %v4451_v61, %v1038_v5  ;;  %3597 = vmatpush.xpose.msk.msrb.mxu2 %vm1201_vm2, %v1099_v2  ;;  %v1118_v11 = vpop.f32.mrf.mxu0  ;;  %v1448_v5 = vld [vmem:[%s4648_s18 + $0x10] sm:$0xff] }
  0xce   : > { %3599 = vmatpush.xpose.msk.msrb.mxu3 %vm1201_vm2, %v1100_v4  ;;  %v1197_v12 = vadd.f32 %v4452_v10, %v1118_v11  ;;  %v1447_v4 = vld [vmem:[%s4648_s18 + $0x8] sm:$0xff] }
  0xcf   : > { %3595 = vmatpush.xpose.msk.msrb.mxu1 %vm1201_vm2, %v1098_v6  ;;  %v1449_v6 = vld [vmem:[%s4648_s18 + $0x18] sm:$0xff] }
  0xd0   : > { %3598 = vmatmul.msk.f32.vlgmr.msrb.gmra.mxu2 %vm1201_vm2, %v999_v7  ;;  %1372 = vmatpush.msra.mxu0 %v1197_v12 }
  0xd1   : > { %3600 = vmatmul.msk.f32.vlgmr.msrb.gmra.mxu3 %vm1201_vm2, %v1000_v9 }
  0xd2   : > { %3596 = vmatmul.msk.f32.vlgmr.msrb.gmra.mxu1 %vm1201_vm2, %v998_v8  ;;  %1468 = vmatpush.msrb.mxu0 %v1446_v3 }
  0xd4   : > { %v1138_v15 = vpop.f32.mrf.mxu1 }
  0xd5   : > { %v1198_v16 = vadd.f32 %v4453_v13, %v1138_v15  ;;  %v1158_v19 = vpop.f32.mrf.mxu2 }
  0xd6   : > { %v1199_v20 = vadd.f32 %v4454_v17, %v1158_v19  ;;  %v1178_v21 = vpop.f32.mrf.mxu3  ;;  %v4456_v17 = vld [vmem:[%s5181_s2] ss:$0 sm:$0xff] }
  0xd7   : > { %1395 = vmatpush.msra.mxu1 %v1198_v16  ;;  %v1200_v22 = vadd.f32 %v4455_v18, %v1178_v21 }
  0xd8   : > { %1418 = vmatpush.msra.mxu2 %v1199_v20 }
  0xd9   : > { %1441 = vmatpush.msra.mxu3 %v1200_v22  ;;  %1491 = vmatpush.msrb.mxu1 %v1447_v4 }
  0xda   : > { %1514 = vmatpush.msrb.mxu2 %v1448_v5  ;;  %v4294_v5 = vld [vmem:[%s4670_s17 + $0x9c] sm:$0xf] }
  0xdb   : > { %1537 = vmatpush.msrb.mxu3 %v1449_v6  ;;  %v3701_v6 = vld [vmem:[%s4670_s17 + $0xd8] sm:$0xf0] }
 0x147   : > { %v1225_v23 = vpop.f32.mrf.mxu0 }
 0x148   : > { %v1306_v24 = vmul.f32 0.35355338, %v1225_v23  ;;  %v4493_v23 = vmov 32.0  }
 0x14a   : > { %v1310_v25 = vsel %vm1201_vm2, %v1306_v24, -inf }
 0x14b   : > { %1311 = vmax.xlane.f32.xlu1 %v1310_v25 }
 0x14f   : > { %v1251_v26 = vpop.f32.mrf.mxu1 }
 0x150   : > { %v1307_v27 = vmul.f32 0.35355338, %v1251_v26 }
 0x152   : > { %v1313_v28 = vsel %vm1201_vm2, %v1307_v27, -inf }
 0x153   : > { %v1277_v29 = vpop.f32.mrf.mxu2  ;;  %1314 = vmax.xlane.f32.xlu1 %v1313_v28 }
 0x154   : > { %v1308_v30 = vmul.f32 0.35355338, %v1277_v29  ;;  %v1303_v32 = vpop.f32.mrf.mxu3 }
 0x155   : > { %v1309_v33 = vmul.f32 0.35355338, %v1303_v32 }
 0x156   : > { %v1316_v31 = vsel %vm1201_vm2, %v1308_v30, -inf }
 0x157   : > { %1317 = vmax.xlane.f32.xlu0 %v1316_v31  ;;  %v1319_v34 = vsel %vm1201_vm2, %v1309_v33, -inf }
 0x15f   : > { %1320 = vmax.xlane.f32.xlu0 %v1319_v34  ;;  %v3675_v34 = vld [vmem:[%s4670_s17 + $0x80] sm:$0xf] }
 0x1be   : > { %v1312_v35 = vpop.xlane.xlu1 %1311 }
 0x1bf   : > { %v1322_v36 = vsub.f32 %v1306_v24, %v1312_v35  ;;  %v4299_v35 = vld [vmem:[%s4670_s17 + $0xbc] sm:$0xf0] }
 0x1c1   : > { %v1326_v37 = vmul.f32 1.442695, %v1322_v36  ;;  %v4291_v36 = vld [vmem:[%s4670_s17 + $0x84] sm:$0xf] }
 0x1c3   : > { %4462 = vpow2.f32 %v1326_v37  ;;  %v3676_v37 = vor.u32 %v4299_v35, %v3675_v34  ;;  %v3707_v34 = vld [vmem:[%s4670_s17 + $0xa0] sm:$0xf] }
 0x1c4   : > { %v4303_v35 = vld [vmem:[%s4670_s17 + $0xdc] sm:$0xf0] }
 0x1c6   : > { %v1315_v38 = vpop.xlane.xlu1 %1314 }
 0x1c7   : > { %v1323_v39 = vsub.f32 %v1307_v27, %v1315_v38  ;;  %v3677_v38 = vld [vmem:[%s4670_s17 + $0xc0] sm:$0xf0] }
 0x1c9   : > { %v4463_v40 = vpop.eup %4462  ;;  %v1328_v41 = vmul.f32 1.442695, %v1323_v39  ;;  %v3683_v39 = vld [vmem:[%s4670_s17 + $0x88] sm:$0xf] }
 0x1ca   : > { %v1318_v42 = vpop.xlane.xlu0 %1317  ;;  %v1334_v43 = vsel %vm1201_vm2, %v4463_v40, 0.0 }
 0x1cb   : > { %4464 = vpow2.f32 %v1328_v41  ;;  %v1324_v44 = vsub.f32 %v1308_v30, %v1318_v42  ;;  %1335 = vadd.xlane.f32.xlu0 %v1334_v43  ;;  %v3680_v41 = vor.u32 %v4291_v36, %v3677_v38  ;;  %v4292_v43 = vld [vmem:[%s4670_s17 + $0x8c] sm:$0xf]  ;;  %v4295_v36 = vld [vmem:[%s4670_s17 + $0xa4] sm:$0xf]  ;;  %v3715_v38 = vld [vmem:[%s4670_s17 + $0xa8] sm:$0xf] }
 0x1cd   : > { %v1330_v45 = vmul.f32 1.442695, %v1324_v44  ;;  %v3685_v44 = vld [vmem:[%s4670_s17 + $0xc8] sm:$0xf0] }
 0x1cf   : > { %4466 = vpow2.f32 %v1330_v45  ;;  %v3688_v45 = vor.u32 %v4292_v43, %v3685_v44  ;;  %v3708_v43 = vor.u32 %v4303_v35, %v3707_v34  ;;  %v4319_v34 = vld [vmem:[%s4682_s3 + $0x60] sm:$0xff] }
 0x1d0   : > { %v4327_v35 = vld [vmem:[%s4682_s3 + $0xa0] sm:$0xff] }
 0x1d1   : > { %v4465_v46 = vpop.eup %4464 }
 0x1d2   : > { %v1321_v47 = vpop.xlane.xlu0 %1320  ;;  %v1337_v48 = vsel %vm1201_vm2, %v4465_v46, 0.0 }
 0x1d3   : > { %v1325_v49 = vsub.f32 %v1309_v33, %v1321_v47  ;;  %1338 = vadd.xlane.f32.xlu1 %v1337_v48  ;;  %v4283_v47 = vld [vmem:[%s4670_s17 + $0x3c] sm:$0xf0]  ;;  %v4275_v48 = vld [vmem:[%s4670_s17 + $0x4] sm:$0xf] }
 0x1d5   : > { %v4467_v50 = vpop.eup %4466  ;;  %v1332_v51 = vmul.f32 1.442695, %v1325_v49 }
 0x1d6   : > { %v1340_v52 = vsel %vm1201_vm2, %v4467_v50, 0.0 }
 0x1d7   : > { %4468 = vpow2.f32 %v1332_v51  ;;  %1341 = vadd.xlane.f32.xlu2 %v1340_v52  ;;  %v3619_v51 = vld [vmem:[%s4670_s17 + $0x8] sm:$0xf] }
 0x1d8   : > { %v4284_v52 = vld [vmem:[%s4670_s17 + $0x44] sm:$0xf0] }
 0x1dd   : > { %v4469_v53 = vpop.eup %4468 }
 0x1de   : > { %v1343_v54 = vsel %vm1201_vm2, %v4469_v53, 0.0 }
 0x1df   : > { %1344 = vadd.xlane.f32.xlu2 %v1343_v54  ;;  %v3620_v54 = vor.u32 %v4284_v52, %v3619_v51  ;;  %v3651_v51 = vld [vmem:[%s4670_s17 + $0x28] sm:$0xf] }
 0x1e0   : > { %v4288_v52 = vld [vmem:[%s4670_s17 + $0x64] sm:$0xf0] }
 0x23e   : > { %v1336_v55 = vpop.xlane.xlu0 %1335 }
 0x23f   : > { %4470 = vrcp.f32 %v1336_v55  ;;  %v4276_v55 = vld [vmem:[%s4670_s17 + $0xc] sm:$0xf] }
 0x245   : > { %v4471_v56 = vpop.eup %4470 }
 0x246   : > { %v1350_v57 = vmul.f32 %v4471_v56, %v4463_v40  ;;  %v1339_v58 = vpop.xlane.xlu1 %1338  ;;  %v4300_v40 = vld [vmem:[%s4670_s17 + $0xc4] sm:$0xf0]  ;;  %v3621_v56 = vld [vmem:[%s4670_s17 + $0x48] sm:$0xf0] }
 0x247   : > { %4472 = vrcp.f32 %v1339_v58  ;;  %v3684_v42 = vor.u32 %v4300_v40, %v3683_v39  ;;  %v4304_v40 = vld [vmem:[%s4670_s17 + $0xe4] sm:$0xf0] }
 0x248   : > { %3601 = vmatmul.msk.f32.vlgmr.msra.gmra.mxu0 %vm1201_vm2, %v1350_v57  ;;  %v3624_v57 = vor.u32 %v4276_v55, %v3621_v56 }
 0x249   : > { %1829 = vmatpush.bf16.msra.mxu0 %v3676_v37  ;;  %v3709_v37 = vld [vmem:[%s4670_s17 + $0xe0] sm:$0xf0] }
 0x24a   : > { %v1342_v59 = vpop.xlane.xlu2 %1341  ;;  %v3712_v44 = vor.u32 %v4295_v36, %v3709_v37  ;;  %v4335_v36 = vld [vmem:[%s4682_s3 + $0xe0] sm:$0xff]  ;;  %v4310_v37 = vld [vmem:[%s4682_s3 + $0x18] sm:$0xff] }
 0x24b   : > { %4474 = vrcp.f32 %v1342_v59  ;;  %v3691_v59 = vld [vmem:[%s4670_s17 + $0x90] sm:$0xf] }
 0x24d   : > { %v4473_v60 = vpop.eup %4472 }
 0x24e   : > { %v1351_v61 = vmul.f32 %v4473_v60, %v4465_v46  ;;  %v3611_v46 = vld [vmem:[%s4670_s17] sm:$0xf]  ;;  %v4301_v60 = vld [vmem:[%s4670_s17 + $0xcc] sm:$0xf0] }
 0x24f   : > { %v3612_v49 = vor.u32 %v4283_v47, %v3611_v46  ;;  %v4287_v46 = vld [vmem:[%s4670_s17 + $0x5c] sm:$0xf0]  ;;  %v3716_v47 = vor.u32 %v4304_v40, %v3715_v38  ;;  %v4318_v38 = vld [vmem:[%s4682_s3 + $0x58] sm:$0xff] }
 0x250   : > { %3602 = vmatmul.msk.f32.vlgmr.msra.gmra.mxu1 %vm1201_vm2, %v1351_v61  ;;  %v4293_v61 = vld [vmem:[%s4670_s17 + $0x94] sm:$0xf]  ;;  %v4326_v40 = vld [vmem:[%s4682_s3 + $0x98] sm:$0xff] }
 0x251   : > { %v4475_v62 = vpop.eup %4474  ;;  %1842 = vmatpush.bf16.msra.mxu1 %v3680_v41  ;;  %1830 = vmatpush.bf16.msra.mxu0 %v3612_v49  ;;  %v4296_v41 = vld [vmem:[%s4670_s17 + $0xac] sm:$0xf]  ;;  %v4279_v49 = vld [vmem:[%s4670_s17 + $0x24] sm:$0xf] }
 0x252   : > { %v1352_v63 = vmul.f32 %v4475_v62, %v4467_v50  ;;  %v1345_v0 = vpop.xlane.xlu2 %1344  ;;  %v3613_v50 = vld [vmem:[%s4670_s17 + $0x40] sm:$0xf0] }
 0x253   : > { %4476 = vrcp.f32 %v1345_v0  ;;  %v3693_v0 = vld [vmem:[%s4670_s17 + $0xd0] sm:$0xf0] }
 0x254   : > { %3603 = vmatmul.msk.f32.vlgmr.msra.gmra.mxu2 %vm1201_vm2, %v1352_v63  ;;  %4478 = vrcp.f32 %v4493_v23  ;;  %v3692_v63 = vor.u32 %v4301_v60, %v3691_v59  ;;  %v3696_v3 = vor.u32 %v4293_v61, %v3693_v0  ;;  %v3723_v59 = vld [vmem:[%s4670_s17 + $0xb0] sm:$0xf]  ;;  %v4297_v61 = vld [vmem:[%s4670_s17 + $0xb4] sm:$0xf]  ;;  %v4306_v0 = vld [vmem:[%s4670_s17 + $0xf4] sm:$0xf0] }
 0x255   : > { %1855 = vmatpush.bf16.msra.mxu2 %v3684_v42  ;;  %v3717_v42 = vld [vmem:[%s4670_s17 + $0xe8] sm:$0xf0]  ;;  %v4305_v60 = vld [vmem:[%s4670_s17 + $0xec] sm:$0xf0] }
 0x259   : > { %v4477_v1 = vpop.eup %4476  ;;  %1856 = vmatpush.bf16.msra.mxu2 %v3620_v54  ;;  %v3653_v54 = vld [vmem:[%s4670_s17 + $0x68] sm:$0xf0] }
 0x25a   : > { %v1353_v2 = vmul.f32 %v4477_v1, %v4469_v53  ;;  %v4479_v24 = vpop.eup %4478  ;;  %v3616_v53 = vor.u32 %v4275_v48, %v3613_v50  ;;  %v3699_v1 = vld [vmem:[%s4670_s17 + $0x98] sm:$0xf]  ;;  %v3720_v48 = vor.u32 %v4296_v41, %v3717_v42  ;;  %v3645_v50 = vld [vmem:[%s4670_s17 + $0x60] sm:$0xf0]  ;;  %v4309_v42 = vld [vmem:[%s4682_s3 + $0x10] sm:$0xff] }
 0x25b   : > { %v1558_v25 = vmul.f32 32.0, %v4479_v24  ;;  %vm1562_vm3 = vweird.f32 %v4479_v24  ;;  %v3648_v56 = vor.u32 %v4279_v49, %v3645_v50  ;;  %v4334_v41 = vld [vmem:[%s4682_s3 + $0xd8] sm:$0xff]  ;;  %v4307_v49 = vld [vmem:[%s4682_s3] sm:$0xff] }
 0x25c   : > { %3604 = vmatmul.msk.f32.vlgmr.msra.gmra.mxu3 %vm1201_vm2, %v1353_v2  ;;  %1843 = vmatpush.bf16.msra.mxu1 %v3616_v53  ;;  %v4302_v2 = vld [vmem:[%s4670_s17 + $0xd4] sm:$0xf0]  ;;  %v4280_v53 = vld [vmem:[%s4670_s17 + $0x2c] sm:$0xf]  ;;  %v4315_v50 = vld [vmem:[%s4682_s3 + $0x40] sm:$0xff] }
 0x25d   : > { %v1559_v26 = vsub.f32 1.0, %v1558_v25  ;;  %1868 = vmatpush.bf16.msra.mxu3 %v3688_v45  ;;  %v3700_v4 = vor.u32 %v4302_v2, %v3699_v1  ;;  %v3643_v45 = vld [vmem:[%s4670_s17 + $0x20] sm:$0xf]  ;;  %v4298_v1 = vld [vmem:[%s4670_s17 + $0xbc] sm:$0xf] }
 0x25e   : > { %v3644_v55 = vor.u32 %v4287_v46, %v3643_v45  ;;  %v3733_v2 = vld [vmem:[%s4670_s17 + $0xf8] sm:$0xf0]  ;;  %v4333_v45 = vld [vmem:[%s4682_s3 + $0xd0] sm:$0xff]  ;;  %v4308_v46 = vld [vmem:[%s4682_s3 + $0x8] sm:$0xff] }
 0x25f   : > { %v1560_v27 = vmul.f32 %v4479_v24, %v1559_v26 }
 0x261   : > { %v1561_v28 = vadd.f32 %v4479_v24, %v1560_v27  ;;  %1869 = vmatpush.bf16.msra.mxu3 %v3624_v57  ;;  %v3652_v57 = vor.u32 %v4288_v52, %v3651_v51  ;;  %v4346_v51 = vld [vmem:[%s4682_s3 + $0x138] sm:$0xff] }
 0x262   : > { %v4354_v52 = vld [vmem:[%s4682_s3 + $0x178] sm:$0xff] }
 0x263   : > { %v4813_v29 = vsel %vm1562_vm3, %v4479_v24, %v1561_v28  ;;  %v4457_v28 = vld [vmem:[%s5182_s22] ss:$0 sm:$0xff] }
 0x2c5   : > { %v1374_v7 = vpop.f32.mrf.mxu0 }
 0x2c6   : > { %3605 = vmatmul.msk.f32.vlgmr.msrb.gmra.mxu0 %vm1201_vm2, %v1374_v7  ;;  %v3627_v7 = vld [vmem:[%s4670_s17 + $0x10] sm:$0xf] }
 0x2c7   : > { %1881 = vmatpush.bf16.msrb.mxu0 %v3692_v63  ;;  %v3731_v63 = vld [vmem:[%s4670_s17 + $0xb8] sm:$0xf] }
 0x2cd   : > { %v1397_v8 = vpop.f32.mrf.mxu1 }
 0x2ce   : > { %3606 = vmatmul.msk.f32.vlgmr.msrb.gmra.mxu1 %vm1201_vm2, %v1397_v8 }
 0x2cf   : > { %1894 = vmatpush.bf16.msrb.mxu1 %v3696_v3  ;;  %v3724_v3 = vor.u32 %v4305_v60, %v3723_v59  ;;  %v4361_v59 = vld [vmem:[%s4682_s3 + $0x1b0] sm:$0xff] }
 0x2d0   : > { %v4369_v60 = vld [vmem:[%s4682_s3 + $0x1f0] sm:$0xff] }
 0x2d7   : > { %v1420_v9 = vpop.f32.mrf.mxu2 }
 0x2d8   : > { %3607 = vmatmul.msk.f32.vlgmr.msrb.gmra.mxu2 %vm1201_vm2, %v1420_v9  ;;  %v3704_v9 = vor.u32 %v4294_v5, %v3701_v6  ;;  %v3659_v5 = vld [vmem:[%s4670_s17 + $0x30] sm:$0xf] }
 0x2d9   : > { %1907 = vmatpush.bf16.msrb.mxu2 %v3700_v4  ;;  %v4289_v6 = vld [vmem:[%s4670_s17 + $0x6c] sm:$0xf0] }
 0x2df   : > { %v1443_v10 = vpop.f32.mrf.mxu3 }
 0x2e0   : > { %3608 = vmatmul.msk.f32.vlgmr.msrb.gmra.mxu3 %vm1201_vm2, %v1443_v10  ;;  %v4285_v10 = vld [vmem:[%s4670_s17 + $0x4c] sm:$0xf0] }
 0x2e1   : > { %1920 = vmatpush.bf16.msrb.mxu3 %v3704_v9  ;;  %v4281_v9 = vld [vmem:[%s4670_s17 + $0x34] sm:$0xf] }
 0x343   : > { %v1470_v12 = vpop.f32.mrf.mxu0 }
 0x34b   : > { %v1493_v11 = vpop.f32.mrf.mxu1 }
 0x34c   : > { %v1544_v15 = vadd.f32 %v1493_v11, %v1470_v12  ;;  %v4277_v11 = vld [vmem:[%s4670_s17 + $0x14] sm:$0xf]  ;;  %v3628_v12 = vor.u32 %v4285_v10, %v3627_v7  ;;  %v3732_v7 = vor.u32 %v4306_v0, %v3731_v63  ;;  %v4360_v63 = vld [vmem:[%s4682_s3 + $0x1a8] sm:$0xff] }
 0x34d   : > { %v3661_v10 = vld [vmem:[%s4670_s17 + $0x70] sm:$0xf0]  ;;  %v4368_v0 = vld [vmem:[%s4682_s3 + $0x1e8] sm:$0xff] }
 0x34e   : > { %1882 = vmatpush.bf16.msrb.mxu0 %v3628_v12  ;;  %v4290_v12 = vld [vmem:[%s4670_s17 + $0x74] sm:$0xf0] }
 0x35b   : > { %v1516_v13 = vpop.f32.mrf.mxu2 }
 0x35c   : > { %v1545_v16 = vadd.f32 %v1544_v15, %v1516_v13  ;;  %v3629_v13 = vld [vmem:[%s4670_s17 + $0x50] sm:$0xf0]  ;;  %v3635_v15 = vld [vmem:[%s4670_s17 + $0x18] sm:$0xf] }
 0x363   : > { %v1539_v18 = vpop.f32.mrf.mxu3 }
 0x364   : > { %v1546_v19 = vadd.f32 %v1545_v16, %v1539_v18  ;;  %v4286_v16 = vld [vmem:[%s4670_s17 + $0x54] sm:$0xf0] }
 0x365   : > { %v3636_v18 = vor.u32 %v4286_v16, %v3635_v15  ;;  %v3669_v15 = vld [vmem:[%s4670_s17 + $0x78] sm:$0xf0]  ;;  %v3660_v16 = vor.u32 %v4289_v6, %v3659_v5 }
 0x366   : > { %v1550_v20 = vadd.f32 %v4456_v17, %v1546_v19  ;;  %v3632_v17 = vor.u32 %v4277_v11, %v3629_v13  ;;  %v4278_v19 = vld [vmem:[%s4670_s17 + $0x1c] sm:$0xf]  ;;  %v3667_v11 = vld [vmem:[%s4670_s17 + $0x38] sm:$0xf] }
 0x367   : > { %1908 = vmatpush.bf16.msrb.mxu2 %v3636_v18  ;;  %v4282_v13 = vld [vmem:[%s4670_s17 + $0x3c] sm:$0xf]  ;;  %v3668_v18 = vor.u32 %v4290_v12, %v3667_v11  ;;  %v4340_v11 = vld [vmem:[%s4682_s3 + $0x108] sm:$0xff] }
 0x368   : > { %v1551_v21 = vadd.f32 %v1550_v20, %v4705_v14  ;;  %v3637_v20 = vld [vmem:[%s4670_s17 + $0x58] sm:$0xf0]  ;;  %1895 = vmatpush.bf16.msrb.mxu1 %v3632_v17  ;;  %v3664_v17 = vor.u32 %v4281_v9, %v3661_v10  ;;  %v4348_v12 = vld [vmem:[%s4682_s3 + $0x148] sm:$0xff] }
 0x369   : > { %v4342_v5 = vld [vmem:[%s4682_s3 + $0x118] sm:$0xff] }
 0x36a   : > { %v1554_v22 = vsel %vm897_vm1, %v1551_v21, 0.0  ;;  %v4350_v6 = vld [vmem:[%s4682_s3 + $0x158] sm:$0xff] }
 0x36b   : > { %1555 = vadd.xlane.f32.xlu2 %v1554_v22  ;;  %v4358_v9 = vld [vmem:[%s4682_s3 + $0x198] sm:$0xff] }
 0x36c   : > { %v4366_v10 = vld [vmem:[%s4682_s3 + $0x1d8] sm:$0xff] }
 0x3de   : > { %v1556_v14 = vpop.xlane.xlu2 %1555 }
 0x3df   : > { %v1564_v30 = vmul.f32 %v4813_v29, %v1556_v14 }
 0x3e1   : > { %v4816_v31 = vsub.f32 %v1551_v21, %v1564_v30  ;;  %v3640_v21 = vor.u32 %v4278_v19, %v3637_v20  ;;  %v4458_v30 = vld [vmem:[%s5183_s26] ss:$0 sm:$0xff]  ;;  %v3672_v19 = vor.u32 %v4282_v13, %v3669_v15  ;;  %v4314_v20 = vld [vmem:[%s4682_s3 + $0x38] sm:$0xff]  ;;  %v4357_v13 = vld [vmem:[%s4682_s3 + $0x190] sm:$0xff]  ;;  %s5188_s26 = sld [smem:[#allocation16_spill]] (!%p4265_p5) }
 0x3e2   : > { %v4365_v15 = vld [vmem:[%s4682_s3 + $0x1d0] sm:$0xff] }
 0x3e3   : > { %v1566_v32 = vmul.f32 %v4816_v31, %v4816_v31  ;;  %1921 = vmatpush.bf16.msrb.mxu3 %v3640_v21  ;;  %v4322_v21 = vld [vmem:[%s4682_s3 + $0x78] sm:$0xff] }
 0x3e5   : > { %v1567_v33 = vsel %vm897_vm1, %v1566_v32, 0.0 }
 0x3e6   : > { %1568 = vadd.xlane.f32.xlu0 %v1567_v33 }
 0x459   : > { %v1569_v58 = vpop.xlane.xlu0 %1568 }
 0x45a   : > { %v1570_v62 = vmul.f32 %v1569_v58, %v4813_v29  ;;  %v3656_v58 = vor.u32 %v4280_v53, %v3653_v54  ;;  %v4323_v53 = vld [vmem:[%s4682_s3 + $0x80] sm:$0xff] }
 0x45b   : > { %v4331_v54 = vld [vmem:[%s4682_s3 + $0xc0] sm:$0xff] }
 0x45c   : > { %v1571_v8 = vadd.f32 1e-05, %v1570_v62  ;;  %v3725_v62 = vld [vmem:[%s4670_s17 + $0xf0] sm:$0xf0] }
 0x45d   : > { %v3728_v4 = vor.u32 %v4297_v61, %v3725_v62  ;;  %v4344_v61 = vld [vmem:[%s4682_s3 + $0x128] sm:$0xff] }
 0x45e   : > { %4480 = vrsqrt.f32 %v1571_v8  ;;  %vm1578_vm5 = vweird.f32 %v1571_v8  ;;  %v4352_v62 = vld [vmem:[%s4682_s3 + $0x168] sm:$0xff] }
 0x464   : > { %v4481_v22 = vpop.eup %4480 }
 0x465   : > { %v1573_v23 = vmul.f32 %v4481_v22, %v1571_v8  ;;  %vm1579_vm4 = vweird.f32 %v4481_v22  ;;  %v3736_v8 = vor.u32 %v4298_v1, %v3733_v2  ;;  %v4343_v1 = vld [vmem:[%s4682_s3 + $0x120] sm:$0xff] }
 0x466   : > { %vm1580_vm6 = vmor %vm1578_vm5, %vm1579_vm4  ;;  %v4351_v2 = vld [vmem:[%s4682_s3 + $0x160] sm:$0xff] }
 0x467   : > { %v1574_v24 = vmul.f32 %v4481_v22, %v1573_v23  ;;  %v4338_v23 = vld [vmem:[%s4682_s3 + $0xf8] sm:$0xff] }
 0x469   : > { %v1575_v25 = vmul.f32 0.5, %v1574_v24  ;;  %v4313_v24 = vld [vmem:[%s4682_s3 + $0x30] sm:$0xff] }
 0x46b   : > { %v1576_v26 = vsub.f32 1.5, %v1575_v25  ;;  %v4321_v25 = vld [vmem:[%s4682_s3 + $0x70] sm:$0xff] }
 0x46d   : > { %v1577_v27 = vmul.f32 %v4481_v22, %v1576_v26  ;;  %v4329_v26 = vld [vmem:[%s4682_s3 + $0xb0] sm:$0xff] }
 0x46f   : > { %v1581_v14 = vsel %vm1580_vm6, %v4481_v22, %v1577_v27  ;;  %v4330_v22 = vld [vmem:[%s4682_s3 + $0xb8] sm:$0xff]  ;;  %v4337_v27 = vld [vmem:[%s4682_s3 + $0xf0] sm:$0xff] }
 0x470   : > { %v1582_v32 = vmul.f32 %v1581_v14, %v4816_v31  ;;  %v4320_v14 = vld [vmem:[%s4682_s3 + $0x68] sm:$0xff] }
 0x472   : > { %v1586_v33 = vmul.f32 %v4457_v28, %v1582_v32  ;;  %v4312_v28 = vld [vmem:[%s4682_s3 + $0x28] sm:$0xff] }
 0x473   : > { %v4336_v32 = vld [vmem:[%s4682_s3 + $0xe8] sm:$0xff] }
 0x474   : > { %v4870_v39 = vadd.f32 %v4458_v30, %v1586_v33  ;;  %v4328_v30 = vld [vmem:[%s4682_s3 + $0xa8] sm:$0xff]  ;;  %v4311_v33 = vld [vmem:[%s4682_s3 + $0x20] sm:$0xff] }
 0x476   : > { %v4877_v31 = vpack.c.bf16 %v4870_v39, %v4870_v39 }
 0x478   : > { %3737 = vmatmul.msk.bf16.vlgmr.msra.gmra.mxu0 %vm897_vm1, %v4877_v31  ;;  %3738 = vmatmul.msk.bf16.vlgmr.msra.gmra.mxu1 %vm897_vm1, %v4877_v31 }
 0x479   : > { %3739 = vmatmul.msk.bf16.vlgmr.msra.gmra.mxu2 %vm897_vm1, %v4877_v31  ;;  %3740 = vmatmul.msk.bf16.vlgmr.msra.gmra.mxu3 %vm897_vm1, %v4877_v31 }
 0x47a   : > { %1933 = vmatpush.bf16.msra.mxu0 %v3708_v43  ;;  %1946 = vmatpush.bf16.msra.mxu1 %v3712_v44  ;;  %v4317_v43 = vld [vmem:[%s4682_s3 + $0x50] sm:$0xff] }
 0x47b   : > { %1959 = vmatpush.bf16.msra.mxu2 %v3716_v47  ;;  %1972 = vmatpush.bf16.msra.mxu3 %v3720_v48  ;;  %v4325_v44 = vld [vmem:[%s4682_s3 + $0x90] sm:$0xff]  ;;  %v4324_v47 = vld [vmem:[%s4682_s3 + $0x88] sm:$0xff] }
 0x47c   : > { %v4332_v48 = vld [vmem:[%s4682_s3 + $0xc8] sm:$0xff] }
 0x47e   : > { %1934 = vmatpush.bf16.msra.mxu0 %v3644_v55  ;;  %1947 = vmatpush.bf16.msra.mxu1 %v3648_v56  ;;  %v4362_v55 = vld [vmem:[%s4682_s3 + $0x1b8] sm:$0xff] }
 0x47f   : > { %1960 = vmatpush.bf16.msra.mxu2 %v3652_v57  ;;  %1973 = vmatpush.bf16.msra.mxu3 %v3656_v58  ;;  %v4370_v56 = vld [vmem:[%s4682_s3 + $0x1f8] sm:$0xff]  ;;  %v4345_v57 = vld [vmem:[%s4682_s3 + $0x130] sm:$0xff] }
 0x480   : > { %v4353_v58 = vld [vmem:[%s4682_s3 + $0x170] sm:$0xff] }
 0x488   : > { %3741 = vmatmul.msk.bf16.vlgmr.msrb.gmra.mxu0 %vm897_vm1, %v4877_v31  ;;  %3742 = vmatmul.msk.bf16.vlgmr.msrb.gmra.mxu1 %vm897_vm1, %v4877_v31 }
 0x489   : > { %3743 = vmatmul.msk.bf16.vlgmr.msrb.gmra.mxu2 %vm897_vm1, %v4877_v31  ;;  %3744 = vmatmul.msk.bf16.vlgmr.msrb.gmra.mxu3 %vm897_vm1, %v4877_v31 }
 0x48a   : > { %1985 = vmatpush.bf16.msrb.mxu0 %v3724_v3  ;;  %1998 = vmatpush.bf16.msrb.mxu1 %v3728_v4  ;;  %v4359_v3 = vld [vmem:[%s4682_s3 + $0x1a0] sm:$0xff] }
 0x48b   : > { %2011 = vmatpush.bf16.msrb.mxu2 %v3732_v7  ;;  %2024 = vmatpush.bf16.msrb.mxu3 %v3736_v8  ;;  %v4367_v4 = vld [vmem:[%s4682_s3 + $0x1e0] sm:$0xff]  ;;  %v4341_v7 = vld [vmem:[%s4682_s3 + $0x110] sm:$0xff] }
 0x48c   : > { %v4349_v8 = vld [vmem:[%s4682_s3 + $0x150] sm:$0xff] }
 0x48e   : > { %1986 = vmatpush.bf16.msrb.mxu0 %v3660_v16  ;;  %1999 = vmatpush.bf16.msrb.mxu1 %v3664_v17  ;;  %v4339_v16 = vld [vmem:[%s4682_s3 + $0x100] sm:$0xff] }
 0x48f   : > { %2012 = vmatpush.bf16.msrb.mxu2 %v3668_v18  ;;  %2025 = vmatpush.bf16.msrb.mxu3 %v3672_v19  ;;  %v4347_v17 = vld [vmem:[%s4682_s3 + $0x140] sm:$0xff]  ;;  %v4356_v18 = vld [vmem:[%s4682_s3 + $0x188] sm:$0xff] }
 0x490   : > { %v4364_v19 = vld [vmem:[%s4682_s3 + $0x1c8] sm:$0xff] }
 0x498   : > { %3745 = vmatmul.msk.bf16.vlgmr.msra.gmra.mxu0 %vm897_vm1, %v4877_v31  ;;  %3746 = vmatmul.msk.bf16.vlgmr.msra.gmra.mxu1 %vm897_vm1, %v4877_v31 }
 0x499   : > { %3747 = vmatmul.msk.bf16.vlgmr.msra.gmra.mxu2 %vm897_vm1, %v4877_v31  ;;  %3748 = vmatmul.msk.bf16.vlgmr.msra.gmra.mxu3 %vm897_vm1, %v4877_v31 }
 0x49a   : > { %3091 = vmatpush.bf16.msra.mxu0 %v4314_v20  ;;  %3104 = vmatpush.bf16.msra.mxu1 %v4322_v21  ;;  %v4355_v20 = vld [vmem:[%s4682_s3 + $0x180] sm:$0xff] }
 0x49b   : > { %3117 = vmatpush.bf16.msra.mxu2 %v4330_v22  ;;  %3130 = vmatpush.bf16.msra.mxu3 %v4338_v23  ;;  %v4363_v21 = vld [vmem:[%s4682_s3 + $0x1c0] sm:$0xff] }
 0x49c   : > { %v5000_v22 = vld [vmem:[%s4676_s5] sm:$0xff] }
 0x49d   : > { %v1628_v23 = vperm.slane %v5000_v22, 0 }
 0x49e   : > { %3092 = vmatpush.bf16.msra.mxu0 %v4313_v24  ;;  %3105 = vmatpush.bf16.msra.mxu1 %v4321_v25  ;;  %v1629_v24 = vperm.slane %v5000_v22, 1 }
 0x49f   : > { %3118 = vmatpush.bf16.msra.mxu2 %v4329_v26  ;;  %3131 = vmatpush.bf16.msra.mxu3 %v4337_v27 }
 0x4a2   : > { %3093 = vmatpush.bf16.msra.mxu0 %v4312_v28  ;;  %3106 = vmatpush.bf16.msra.mxu1 %v4320_v14 }
 0x4a3   : > { %3119 = vmatpush.bf16.msra.mxu2 %v4328_v30  ;;  %3132 = vmatpush.bf16.msra.mxu3 %v4336_v32  ;;  %v1630_v32 = vperm.slane %v5000_v22, 2 }
 0x4a6   : > { %3094 = vmatpush.bf16.msra.mxu0 %v4311_v33  ;;  %3107 = vmatpush.bf16.msra.mxu1 %v4319_v34  ;;  %v1631_v33 = vperm.slane %v5000_v22, 3  ;;  %v4378_v34 = vld [vmem:[%s4682_s3 + $0x238] sm:$0xff] }
 0x4a7   : > { %3120 = vmatpush.bf16.msra.mxu2 %v4327_v35  ;;  %3133 = vmatpush.bf16.msra.mxu3 %v4335_v36  ;;  %v4386_v35 = vld [vmem:[%s4682_s3 + $0x278] sm:$0xff] }
 0x4a8   : > { %3749 = vmatmul.msk.bf16.vlgmr.msrb.gmra.mxu0 %vm897_vm1, %v4877_v31  ;;  %3750 = vmatmul.msk.bf16.vlgmr.msrb.gmra.mxu1 %vm897_vm1, %v4877_v31 }
 0x4a9   : > { %3751 = vmatmul.msk.bf16.vlgmr.msrb.gmra.mxu2 %vm897_vm1, %v4877_v31  ;;  %3752 = vmatmul.msk.bf16.vlgmr.msrb.gmra.mxu3 %vm897_vm1, %v4877_v31  ;;  %v4316_v31 = vld [vmem:[%s4682_s3 + $0x48] sm:$0xff] }
 0x4aa   : > { %3095 = vmatpush.bf16.msra.mxu0 %v4310_v37  ;;  %3108 = vmatpush.bf16.msra.mxu1 %v4318_v38 }
 0x4ab   : > { %3121 = vmatpush.bf16.msra.mxu2 %v4326_v40  ;;  %3134 = vmatpush.bf16.msra.mxu3 %v4334_v41 }
 0x4ae   : > { %3096 = vmatpush.bf16.msra.mxu0 %v4309_v42  ;;  %3109 = vmatpush.bf16.msra.mxu1 %v4317_v43 }
 0x4af   : > { %3122 = vmatpush.bf16.msra.mxu2 %v4325_v44  ;;  %3135 = vmatpush.bf16.msra.mxu3 %v4333_v45  ;;  %v4377_v45 = vld [vmem:[%s4682_s3 + $0x230] sm:$0xff] }
 0x4b2   : > { %3097 = vmatpush.bf16.msra.mxu0 %v4308_v46  ;;  %3110 = vmatpush.bf16.msra.mxu1 %v4316_v31  ;;  %v4385_v46 = vld [vmem:[%s4682_s3 + $0x270] sm:$0xff] }
 0x4b3   : > { %3123 = vmatpush.bf16.msra.mxu2 %v4324_v47  ;;  %3136 = vmatpush.bf16.msra.mxu3 %v4332_v48  ;;  %v4394_v48 = vld [vmem:[%s4682_s3 + $0x2b8] sm:$0xff] }
 0x4b6   : > { %3098 = vmatpush.bf16.msra.mxu0 %v4307_v49  ;;  %3111 = vmatpush.bf16.msra.mxu1 %v4315_v50  ;;  %v4402_v49 = vld [vmem:[%s4682_s3 + $0x2f8] sm:$0xff] }
 0x4b7   : > { %3124 = vmatpush.bf16.msra.mxu2 %v4323_v53  ;;  %3137 = vmatpush.bf16.msra.mxu3 %v4331_v54  ;;  %v4384_v53 = vld [vmem:[%s4682_s3 + $0x268] sm:$0xff]  ;;  %v1632_v54 = vperm.slane %v5000_v22, 4 }
 0x4ba   : > { %3143 = vmatpush.bf16.msrb.mxu0 %v4346_v51  ;;  %3156 = vmatpush.bf16.msrb.mxu1 %v4354_v52  ;;  %v4376_v52 = vld [vmem:[%s4682_s3 + $0x228] sm:$0xff] }
 0x4bb   : > { %3169 = vmatpush.bf16.msrb.mxu2 %v4362_v55  ;;  %3182 = vmatpush.bf16.msrb.mxu3 %v4370_v56  ;;  %v1633_v55 = vperm.slane %v5000_v22, 5 }
 0x4be   : > { %3144 = vmatpush.bf16.msrb.mxu0 %v4345_v57  ;;  %3157 = vmatpush.bf16.msrb.mxu1 %v4353_v58  ;;  %v4393_v58 = vld [vmem:[%s4682_s3 + $0x2b0] sm:$0xff] }
 0x4bf   : > { %3170 = vmatpush.bf16.msrb.mxu2 %v4361_v59  ;;  %3183 = vmatpush.bf16.msrb.mxu3 %v4369_v60  ;;  %v4401_v59 = vld [vmem:[%s4682_s3 + $0x2f0] sm:$0xff] }
 0x4c2   : > { %3145 = vmatpush.bf16.msrb.mxu0 %v4344_v61  ;;  %3158 = vmatpush.bf16.msrb.mxu1 %v4352_v62  ;;  %v4375_v62 = vld [vmem:[%s4682_s3 + $0x220] sm:$0xff] }
 0x4c3   : > { %3171 = vmatpush.bf16.msrb.mxu2 %v4360_v63  ;;  %3184 = vmatpush.bf16.msrb.mxu3 %v4368_v0  ;;  %v4383_v63 = vld [vmem:[%s4682_s3 + $0x260] sm:$0xff] }
 0x4c6   : > { %3146 = vmatpush.bf16.msrb.mxu0 %v4343_v1  ;;  %3159 = vmatpush.bf16.msrb.mxu1 %v4351_v2 }
 0x4c7   : > { %3172 = vmatpush.bf16.msrb.mxu2 %v4359_v3  ;;  %3185 = vmatpush.bf16.msrb.mxu3 %v4367_v4  ;;  %v4392_v4 = vld [vmem:[%s4682_s3 + $0x2a8] sm:$0xff] }
 0x4ca   : > { %3147 = vmatpush.bf16.msrb.mxu0 %v4342_v5  ;;  %3160 = vmatpush.bf16.msrb.mxu1 %v4350_v6  ;;  %v4400_v5 = vld [vmem:[%s4682_s3 + $0x2e8] sm:$0xff]  ;;  %v1634_v6 = vperm.slane %v5000_v22, 6 }
 0x4cb   : > { %3173 = vmatpush.bf16.msrb.mxu2 %v4358_v9  ;;  %3186 = vmatpush.bf16.msrb.mxu3 %v4366_v10  ;;  %v4374_v10 = vld [vmem:[%s4682_s3 + $0x218] sm:$0xff] }
 0x4ce   : > { %3148 = vmatpush.bf16.msrb.mxu0 %v4341_v7  ;;  %3161 = vmatpush.bf16.msrb.mxu1 %v4349_v8  ;;  %v1635_v7 = vperm.slane %v5000_v22, 7  ;;  %v4381_v22 = vld [vmem:[%s4682_s3 + $0x250] sm:$0xff] }
 0x4cf   : > { %3174 = vmatpush.bf16.msrb.mxu2 %v4357_v13  ;;  %3187 = vmatpush.bf16.msrb.mxu3 %v4365_v15  ;;  %v4391_v15 = vld [vmem:[%s4682_s3 + $0x2a0] sm:$0xff] }
 0x4d2   : > { %3149 = vmatpush.bf16.msrb.mxu0 %v4340_v11  ;;  %3162 = vmatpush.bf16.msrb.mxu1 %v4348_v12  ;;  %v4382_v11 = vld [vmem:[%s4682_s3 + $0x258] sm:$0xff] }
 0x4d3   : > { %3175 = vmatpush.bf16.msrb.mxu2 %v4356_v18  ;;  %3188 = vmatpush.bf16.msrb.mxu3 %v4364_v19 }
 0x4d6   : > { %3150 = vmatpush.bf16.msrb.mxu0 %v4339_v16  ;;  %3163 = vmatpush.bf16.msrb.mxu1 %v4347_v17  ;;  %v4399_v16 = vld [vmem:[%s4682_s3 + $0x2e0] sm:$0xff] }
 0x4d7   : > { %3176 = vmatpush.bf16.msrb.mxu2 %v4355_v20  ;;  %3189 = vmatpush.bf16.msrb.mxu3 %v4363_v21  ;;  %v4373_v21 = vld [vmem:[%s4682_s3 + $0x210] sm:$0xff] }
 0x4f5   : > { %v1832_v25 = vpop.f32.mrf.mxu0  ;;  %v1845_v26 = vpop.f32.mrf.mxu1 }
 0x4f6   : > { %v1833_v27 = vadd.f32 %v1832_v25, %v1628_v23  ;;  %v1846_v28 = vadd.f32 %v1845_v26, %v1629_v24  ;;  %v5031_v25 = vld [vmem:[%s4676_s5 + $0x8] sm:$0xff]  ;;  %v4390_v26 = vld [vmem:[%s4682_s3 + $0x298] sm:$0xff] }
 0x4f8   : > { %v2031_v14 = vmax.f32 %v1833_v27, 0.0  ;;  %v2032_v30 = vmax.f32 %v1846_v28, 0.0  ;;  %v4398_v27 = vld [vmem:[%s4682_s3 + $0x2d8] sm:$0xff] }
 0x4fa   : > { %v2047_v36 = vpack.c.bf16 %v2031_v14, %v2031_v14  ;;  %v2048_v37 = vpack.c.bf16 %v2032_v30, %v2032_v30  ;;  %v4372_v30 = vld [vmem:[%s4682_s3 + $0x208] sm:$0xff] }
 0x4fc   : > { %v1858_v38 = vpop.f32.mrf.mxu2  ;;  %v1871_v40 = vpop.f32.mrf.mxu3  ;;  %3099 = vmatmul.bf16.vlgmr.msra.gmra.mxu0 %v2047_v36  ;;  %3112 = vmatmul.bf16.vlgmr.msra.gmra.mxu1 %v2048_v37  ;;  %v4389_v37 = vld [vmem:[%s4682_s3 + $0x290] sm:$0xff] }
 0x4fd   : > { %v1859_v41 = vadd.f32 %v1858_v38, %v1630_v32  ;;  %v1872_v42 = vadd.f32 %v1871_v40, %v1631_v33  ;;  %3195 = vmatpush.bf16.msra.mxu0 %v4378_v34  ;;  %3208 = vmatpush.bf16.msra.mxu1 %v4386_v35  ;;  %v1834_v43 = vpop.f32.mrf.mxu0  ;;  %v1847_v44 = vpop.f32.mrf.mxu1  ;;  %v4380_v32 = vld [vmem:[%s4682_s3 + $0x248] sm:$0xff]  ;;  %v1636_v33 = vperm.slane %v5031_v25, 0  ;;  %v1637_v34 = vperm.slane %v5031_v25, 1  ;;  %v4397_v38 = vld [vmem:[%s4682_s3 + $0x2d0] sm:$0xff] }
 0x4fe   : > { %v4371_v44 = vld [vmem:[%s4682_s3 + $0x200] sm:$0xff] }
 0x4ff   : > { %v2033_v31 = vmax.f32 %v1859_v41, 0.0  ;;  %v2034_v47 = vmax.f32 %v1872_v42, 0.0 }
 0x501   : > { %v2049_v50 = vpack.c.bf16 %v2033_v31, %v2033_v31  ;;  %v2050_v51 = vpack.c.bf16 %v2034_v47, %v2034_v47  ;;  %3196 = vmatpush.bf16.msra.mxu0 %v4377_v45  ;;  %3209 = vmatpush.bf16.msra.mxu1 %v4385_v46  ;;  %v4379_v45 = vld [vmem:[%s4682_s3 + $0x240] sm:$0xff]  ;;  %v4410_v46 = vld [vmem:[%s4682_s3 + $0x338] sm:$0xff] }
 0x502   : > { %v4418_v31 = vld [vmem:[%s4682_s3 + $0x378] sm:$0xff] }
 0x503   : > { %3125 = vmatmul.bf16.vlgmr.msra.gmra.mxu2 %v2049_v50  ;;  %3138 = vmatmul.bf16.vlgmr.msra.gmra.mxu3 %v2050_v51  ;;  %v4396_v50 = vld [vmem:[%s4682_s3 + $0x2c8] sm:$0xff]  ;;  %v1638_v51 = vperm.slane %v5031_v25, 2 }
 0x504   : > { %3221 = vmatpush.bf16.msra.mxu2 %v4394_v48  ;;  %3234 = vmatpush.bf16.msra.mxu3 %v4402_v49  ;;  %v1860_v56 = vpop.f32.mrf.mxu2  ;;  %v1873_v57 = vpop.f32.mrf.mxu3  ;;  %v4388_v49 = vld [vmem:[%s4682_s3 + $0x288] sm:$0xff] }
 0x505   : > { %3197 = vmatpush.bf16.msra.mxu0 %v4376_v52  ;;  %3210 = vmatpush.bf16.msra.mxu1 %v4384_v53  ;;  %v1884_v60 = vpop.f32.mrf.mxu0  ;;  %v1897_v61 = vpop.f32.mrf.mxu1  ;;  %v1639_v52 = vperm.slane %v5031_v25, 3  ;;  %v4417_v56 = vld [vmem:[%s4682_s3 + $0x370] sm:$0xff] }
 0x506   : > { %v1885_v0 = vadd.f32 %v1884_v60, %v1632_v54  ;;  %v1898_v1 = vadd.f32 %v1897_v61, %v1633_v55  ;;  %v4409_v55 = vld [vmem:[%s4682_s3 + $0x330] sm:$0xff]  ;;  %v4395_v60 = vld [vmem:[%s4682_s3 + $0x2c0] sm:$0xff] }
 0x508   : > { %v2035_v2 = vmax.f32 %v1885_v0, 0.0  ;;  %v2036_v3 = vmax.f32 %v1898_v1, 0.0  ;;  %3222 = vmatpush.bf16.msra.mxu2 %v4393_v58  ;;  %3235 = vmatpush.bf16.msra.mxu3 %v4401_v59  ;;  %v4387_v59 = vld [vmem:[%s4682_s3 + $0x280] sm:$0xff]  ;;  %v4426_v1 = vld [vmem:[%s4682_s3 + $0x3b8] sm:$0xff] }
 0x509   : > { %3198 = vmatpush.bf16.msra.mxu0 %v4375_v62  ;;  %3211 = vmatpush.bf16.msra.mxu1 %v4383_v63 }
 0x50a   : > { %v2051_v8 = vpack.c.bf16 %v2035_v2, %v2035_v2  ;;  %v2052_v9 = vpack.c.bf16 %v2036_v3, %v2036_v3  ;;  %v4434_v2 = vld [vmem:[%s4682_s3 + $0x3f8] sm:$0xff] }
 0x50c   : > { %3223 = vmatpush.bf16.msra.mxu2 %v4392_v4  ;;  %3236 = vmatpush.bf16.msra.mxu3 %v4400_v5  ;;  %v1910_v12 = vpop.f32.mrf.mxu2  ;;  %v1923_v13 = vpop.f32.mrf.mxu3  ;;  %v4408_v5 = vld [vmem:[%s4682_s3 + $0x328] sm:$0xff] }
 0x50d   : > { %v1911_v17 = vadd.f32 %v1910_v12, %v1634_v6  ;;  %v1924_v18 = vadd.f32 %v1923_v13, %v1635_v7  ;;  %3151 = vmatmul.bf16.vlgmr.msrb.gmra.mxu0 %v2051_v8  ;;  %3164 = vmatmul.bf16.vlgmr.msrb.gmra.mxu1 %v2052_v9  ;;  %v1886_v19 = vpop.f32.mrf.mxu0  ;;  %v1899_v20 = vpop.f32.mrf.mxu1  ;;  %v4416_v6 = vld [vmem:[%s4682_s3 + $0x368] sm:$0xff]  ;;  %v4425_v9 = vld [vmem:[%s4682_s3 + $0x3b0] sm:$0xff]  ;;  %v4415_v12 = vld [vmem:[%s4682_s3 + $0x360] sm:$0xff] }
 0x50e   : > { %3199 = vmatpush.bf16.msra.mxu0 %v4374_v10  ;;  %3212 = vmatpush.bf16.msra.mxu1 %v4382_v11  ;;  %v4433_v10 = vld [vmem:[%s4682_s3 + $0x3f0] sm:$0xff]  ;;  %v4407_v11 = vld [vmem:[%s4682_s3 + $0x320] sm:$0xff]  ;;  %v4432_v19 = vld [vmem:[%s4682_s3 + $0x3e8] sm:$0xff] }
 0x50f   : > { %v2037_v23 = vmax.f32 %v1911_v17, 0.0  ;;  %v2038_v24 = vmax.f32 %v1924_v18, 0.0  ;;  %v4424_v18 = vld [vmem:[%s4682_s3 + $0x3a8] sm:$0xff]  ;;  %v4406_v20 = vld [vmem:[%s4682_s3 + $0x318] sm:$0xff] }
 0x510   : > { %3224 = vmatpush.bf16.msra.mxu2 %v4391_v15  ;;  %3237 = vmatpush.bf16.msra.mxu3 %v4399_v16 }
 0x511   : > { %v2053_v28 = vpack.c.bf16 %v2037_v23, %v2037_v23  ;;  %v2054_v14 = vpack.c.bf16 %v2038_v24, %v2038_v24  ;;  %v4431_v23 = vld [vmem:[%s4682_s3 + $0x3e0] sm:$0xff]  ;;  %v4405_v24 = vld [vmem:[%s4682_s3 + $0x310] sm:$0xff] }
 0x512   : > { %3200 = vmatpush.bf16.msra.mxu0 %v4373_v21  ;;  %3213 = vmatpush.bf16.msra.mxu1 %v4381_v22  ;;  %v4414_v21 = vld [vmem:[%s4682_s3 + $0x358] sm:$0xff]  ;;  %v4423_v22 = vld [vmem:[%s4682_s3 + $0x3a0] sm:$0xff] }
 0x513   : > { %3177 = vmatmul.bf16.vlgmr.msrb.gmra.mxu2 %v2053_v28  ;;  %3190 = vmatmul.bf16.vlgmr.msrb.gmra.mxu3 %v2054_v14  ;;  %v1641_v28 = vperm.slane %v5031_v25, 5 }
 0x514   : > { %3225 = vmatpush.bf16.msra.mxu2 %v4390_v26  ;;  %3238 = vmatpush.bf16.msra.mxu3 %v4398_v27  ;;  %v1912_v35 = vpop.f32.mrf.mxu2  ;;  %v1925_v36 = vpop.f32.mrf.mxu3  ;;  %v4413_v26 = vld [vmem:[%s4682_s3 + $0x350] sm:$0xff]  ;;  %v1640_v27 = vperm.slane %v5031_v25, 4 }
 0x515   : > { %v1936_v40 = vpop.f32.mrf.mxu0  ;;  %v1949_v41 = vpop.f32.mrf.mxu1  ;;  %v4430_v35 = vld [vmem:[%s4682_s3 + $0x3d8] sm:$0xff]  ;;  %v4404_v36 = vld [vmem:[%s4682_s3 + $0x308] sm:$0xff] }
 0x516   : > { %3201 = vmatpush.bf16.msra.mxu0 %v4372_v30  ;;  %3214 = vmatpush.bf16.msra.mxu1 %v4380_v32  ;;  %v1937_v42 = vadd.f32 %v1936_v40, %v1636_v33  ;;  %v1950_v43 = vadd.f32 %v1949_v41, %v1637_v34  ;;  %v4422_v34 = vld [vmem:[%s4682_s3 + $0x398] sm:$0xff]  ;;  %v4421_v41 = vld [vmem:[%s4682_s3 + $0x390] sm:$0xff] }
 0x518   : > { %v2039_v47 = vmax.f32 %v1937_v42, 0.0  ;;  %v2040_v48 = vmax.f32 %v1950_v43, 0.0  ;;  %3226 = vmatpush.bf16.msra.mxu2 %v4389_v37  ;;  %3239 = vmatpush.bf16.msra.mxu3 %v4397_v38  ;;  %v4412_v37 = vld [vmem:[%s4682_s3 + $0x348] sm:$0xff]  ;;  %v4429_v42 = vld [vmem:[%s4682_s3 + $0x3d0] sm:$0xff]  ;;  %v1642_v43 = vperm.slane %v5031_v25, 6 }
 0x51a   : > { %v2055_v53 = vpack.c.bf16 %v2039_v47, %v2039_v47  ;;  %v2056_v54 = vpack.c.bf16 %v2040_v48, %v2040_v48  ;;  %3202 = vmatpush.bf16.msra.mxu0 %v4371_v44  ;;  %3215 = vmatpush.bf16.msra.mxu1 %v4379_v45  ;;  %v1643_v44 = vperm.slane %v5031_v25, 7  ;;  %v4403_v45 = vld [vmem:[%s4682_s3 + $0x300] sm:$0xff] }
 0x51c   : > { %3227 = vmatpush.bf16.msra.mxu2 %v4388_v49  ;;  %3240 = vmatpush.bf16.msra.mxu3 %v4396_v50  ;;  %v1962_v57 = vpop.f32.mrf.mxu2  ;;  %v1975_v58 = vpop.f32.mrf.mxu3  ;;  %v4420_v50 = vld [vmem:[%s4682_s3 + $0x388] sm:$0xff] }
 0x51d   : > { %v1963_v61 = vadd.f32 %v1962_v57, %v1638_v51  ;;  %v1976_v62 = vadd.f32 %v1975_v58, %v1639_v52  ;;  %3203 = vmatmul.bf16.vlgmr.msra.gmra.mxu0 %v2055_v53  ;;  %3216 = vmatmul.bf16.vlgmr.msra.gmra.mxu1 %v2056_v54  ;;  %v1938_v63 = vpop.f32.mrf.mxu0  ;;  %v1951_v0 = vpop.f32.mrf.mxu1  ;;  %v4428_v51 = vld [vmem:[%s4682_s3 + $0x3c8] sm:$0xff] }
 0x51e   : > { %3247 = vmatpush.bf16.msrb.mxu0 %v4410_v46  ;;  %3260 = vmatpush.bf16.msrb.mxu1 %v4418_v31  ;;  %v4411_v46 = vld [vmem:[%s4682_s3 + $0x340] sm:$0xff] }
 0x51f   : > { %v2041_v3 = vmax.f32 %v1963_v61, 0.0  ;;  %v2042_v4 = vmax.f32 %v1976_v62, 0.0 }
 0x520   : > { %3228 = vmatpush.bf16.msra.mxu2 %v4387_v59  ;;  %3241 = vmatpush.bf16.msra.mxu3 %v4395_v60 }
 0x521   : > { %v2057_v7 = vpack.c.bf16 %v2041_v3, %v2041_v3  ;;  %v2058_v8 = vpack.c.bf16 %v2042_v4, %v2042_v4 }
 0x522   : > { %3248 = vmatpush.bf16.msrb.mxu0 %v4409_v55  ;;  %3261 = vmatpush.bf16.msrb.mxu1 %v4417_v56  ;;  %v4419_v55 = vld [vmem:[%s4682_s3 + $0x380] sm:$0xff] }
 0x523   : > { %3229 = vmatmul.bf16.vlgmr.msra.gmra.mxu2 %v2057_v7  ;;  %3242 = vmatmul.bf16.vlgmr.msra.gmra.mxu3 %v2058_v8  ;;  %v4427_v56 = vld [vmem:[%s4682_s3 + $0x3c0] sm:$0xff] }
 0x524   : > { %3273 = vmatpush.bf16.msrb.mxu2 %v4426_v1  ;;  %3286 = vmatpush.bf16.msrb.mxu3 %v4434_v2  ;;  %v1964_v13 = vpop.f32.mrf.mxu2  ;;  %v1977_v15 = vpop.f32.mrf.mxu3  ;;  %v4459_v7 = vld [vmem:[%s839_s0] ss:$0 sm:$0xff]  ;;  %s5189_s0 = sld [smem:[#allocation17_spill]] (!%p4265_p5) }
 0x525   : > { %v1988_v16 = vpop.f32.mrf.mxu0  ;;  %v2001_v17 = vpop.f32.mrf.mxu1 }
 0x526   : > { %3249 = vmatpush.bf16.msrb.mxu0 %v4408_v5  ;;  %3262 = vmatpush.bf16.msrb.mxu1 %v4416_v6  ;;  %v1989_v38 = vadd.f32 %v1988_v16, %v1640_v27  ;;  %v2002_v40 = vadd.f32 %v2001_v17, %v1641_v28 }
 0x528   : > { %3274 = vmatpush.bf16.msrb.mxu2 %v4425_v9  ;;  %3287 = vmatpush.bf16.msrb.mxu3 %v4433_v10  ;;  %v2043_v31 = vmax.f32 %v1989_v38, 0.0  ;;  %v2044_v47 = vmax.f32 %v2002_v40, 0.0 }
 0x52a   : > { %3250 = vmatpush.bf16.msrb.mxu0 %v4407_v11  ;;  %3263 = vmatpush.bf16.msrb.mxu1 %v4415_v12  ;;  %v2059_v54 = vpack.c.bf16 %v2043_v31, %v2043_v31  ;;  %v2060_v25 = vpack.c.bf16 %v2044_v47, %v2044_v47 }
 0x52c   : > { %3275 = vmatpush.bf16.msrb.mxu2 %v4424_v18  ;;  %3288 = vmatpush.bf16.msrb.mxu3 %v4432_v19  ;;  %v2014_v14 = vpop.f32.mrf.mxu2  ;;  %v2027_v30 = vpop.f32.mrf.mxu3 }
 0x52d   : > { %v1990_v32 = vpop.f32.mrf.mxu0  ;;  %v2003_v33 = vpop.f32.mrf.mxu1  ;;  %v2015_v52 = vadd.f32 %v2014_v14, %v1642_v43  ;;  %v2028_v53 = vadd.f32 %v2027_v30, %v1643_v44 }
 0x52e   : > { %3251 = vmatpush.bf16.msrb.mxu0 %v4406_v20  ;;  %3264 = vmatpush.bf16.msrb.mxu1 %v4414_v21 }
 0x52f   : > { %v2045_v57 = vmax.f32 %v2015_v52, 0.0  ;;  %v2046_v58 = vmax.f32 %v2028_v53, 0.0 }
 0x530   : > { %3276 = vmatpush.bf16.msrb.mxu2 %v4423_v22  ;;  %3289 = vmatpush.bf16.msrb.mxu3 %v4431_v23 }
 0x531   : > { %v2061_v59 = vpack.c.bf16 %v2045_v57, %v2045_v57  ;;  %v2062_v60 = vpack.c.bf16 %v2046_v58, %v2046_v58 }
 0x532   : > { %3252 = vmatpush.bf16.msrb.mxu0 %v4405_v24  ;;  %3265 = vmatpush.bf16.msrb.mxu1 %v4413_v26 }
 0x534   : > { %3277 = vmatpush.bf16.msrb.mxu2 %v4422_v34  ;;  %3290 = vmatpush.bf16.msrb.mxu3 %v4430_v35  ;;  %v2016_v48 = vpop.f32.mrf.mxu2  ;;  %v2029_v49 = vpop.f32.mrf.mxu3 }
 0x536   : > { %3253 = vmatpush.bf16.msrb.mxu0 %v4404_v36  ;;  %3266 = vmatpush.bf16.msrb.mxu1 %v4412_v37 }
 0x538   : > { %3278 = vmatpush.bf16.msrb.mxu2 %v4421_v41  ;;  %3291 = vmatpush.bf16.msrb.mxu3 %v4429_v42 }
 0x53a   : > { %3254 = vmatpush.bf16.msrb.mxu0 %v4403_v45  ;;  %3267 = vmatpush.bf16.msrb.mxu1 %v4411_v46 }
 0x53c   : > { %3279 = vmatpush.bf16.msrb.mxu2 %v4420_v50  ;;  %3292 = vmatpush.bf16.msrb.mxu3 %v4428_v51 }
 0x53d   : > { %3255 = vmatmul.bf16.vlgmr.msrb.gmra.mxu0 %v2059_v54  ;;  %3268 = vmatmul.bf16.vlgmr.msrb.gmra.mxu1 %v2060_v25 }
 0x540   : > { %3280 = vmatpush.bf16.msrb.mxu2 %v4419_v55  ;;  %3293 = vmatpush.bf16.msrb.mxu3 %v4427_v56 }
 0x543   : > { %3281 = vmatmul.bf16.vlgmr.msrb.gmra.mxu2 %v2061_v59  ;;  %3294 = vmatmul.bf16.vlgmr.msrb.gmra.mxu3 %v2062_v60 }
 0x579   : > { %v3100_v61 = vpop.f32.mrf.mxu0  ;;  %v3113_v62 = vpop.f32.mrf.mxu1 }
 0x57a   : > { %v3101_v10 = vadd.f32 %v4459_v7, %v3100_v61 }
 0x57c   : > { %v3114_v13 = vadd.f32 %v3113_v62, %v3101_v10 }
 0x581   : > { %v3102_v63 = vpop.f32.mrf.mxu0  ;;  %v3115_v0 = vpop.f32.mrf.mxu1 }
 0x582   : > { %v4460_v63 = vld [vmem:[%s5184_s29] ss:$0 sm:$0xff] }
 0x586   : > { %v3126_v1 = vpop.f32.mrf.mxu2  ;;  %v3139_v2 = vpop.f32.mrf.mxu3 }
 0x587   : > { %v3127_v17 = vadd.f32 %v3126_v1, %v3114_v13 }
 0x589   : > { %v3140_v20 = vadd.f32 %v3139_v2, %v3127_v17 }
 0x58a   : > { %v3152_v3 = vpop.f32.mrf.mxu0  ;;  %v3165_v4 = vpop.f32.mrf.mxu1 }
 0x58b   : > { %v3153_v23 = vadd.f32 %v3152_v3, %v3140_v20 }
 0x58d   : > { %v3166_v27 = vadd.f32 %v3165_v4, %v3153_v23 }
 0x58e   : > { %v3128_v5 = vpop.f32.mrf.mxu2  ;;  %v3141_v6 = vpop.f32.mrf.mxu3 }
 0x592   : > { %v3154_v8 = vpop.f32.mrf.mxu0  ;;  %v3167_v9 = vpop.f32.mrf.mxu1 }
 0x596   : > { %v3178_v11 = vpop.f32.mrf.mxu2  ;;  %v3191_v12 = vpop.f32.mrf.mxu3 }
 0x597   : > { %v3179_v28 = vadd.f32 %v3178_v11, %v3166_v27 }
 0x599   : > { %v3192_v14 = vadd.f32 %v3191_v12, %v3179_v28 }
 0x59a   : > { %v3204_v15 = vpop.f32.mrf.mxu0  ;;  %v3217_v16 = vpop.f32.mrf.mxu1 }
 0x59b   : > { %v3205_v33 = vadd.f32 %v3204_v15, %v3192_v14 }
 0x59d   : > { %v3218_v34 = vadd.f32 %v3217_v16, %v3205_v33 }
 0x59e   : > { %v3180_v18 = vpop.f32.mrf.mxu2  ;;  %v3193_v19 = vpop.f32.mrf.mxu3 }
 0x5a2   : > { %v3206_v21 = vpop.f32.mrf.mxu0  ;;  %v3219_v22 = vpop.f32.mrf.mxu1 }
 0x5a6   : > { %v3230_v24 = vpop.f32.mrf.mxu2  ;;  %v3243_v26 = vpop.f32.mrf.mxu3 }
 0x5a7   : > { %v3231_v37 = vadd.f32 %v3230_v24, %v3218_v34 }
 0x5a9   : > { %v3244_v38 = vadd.f32 %v3243_v26, %v3231_v37 }
 0x5ae   : > { %v3232_v30 = vpop.f32.mrf.mxu2  ;;  %v3245_v32 = vpop.f32.mrf.mxu3 }
 0x5ba   : > { %v3256_v35 = vpop.f32.mrf.mxu0  ;;  %v3269_v36 = vpop.f32.mrf.mxu1 }
 0x5bb   : > { %v3257_v40 = vadd.f32 %v3256_v35, %v3244_v38 }
 0x5bd   : > { %v3270_v43 = vadd.f32 %v3269_v36, %v3257_v40 }
 0x5c2   : > { %v3258_v41 = vpop.f32.mrf.mxu0  ;;  %v3271_v42 = vpop.f32.mrf.mxu1 }
 0x5c6   : > { %v3282_v44 = vpop.f32.mrf.mxu2  ;;  %v3295_v45 = vpop.f32.mrf.mxu3 }
 0x5c7   : > { %v3283_v46 = vadd.f32 %v3282_v44, %v3270_v43 }
 0x5c9   : > { %v3296_v31 = vadd.f32 %v3295_v45, %v3283_v46 }
 0x5cb   : > { %v3299_v47 = vadd.f32 %v3296_v31, %v4870_v39 }
 0x5cd   : > { %v3302_v48 = vsel %vm897_vm1, %v3299_v47, 0.0 }
 0x5ce   : > { %v3284_v49 = vpop.f32.mrf.mxu2  ;;  %v3297_v50 = vpop.f32.mrf.mxu3  ;;  %3303 = vadd.xlane.f32.xlu1 %v3302_v48 }
 0x641   : > { %v3304_v51 = vpop.xlane.xlu1 %3303 }
 0x642   : > { %v3305_v52 = vmul.f32 %v3304_v51, %v4813_v29 }
 0x644   : > { %v3306_v53 = vsub.f32 %v3299_v47, %v3305_v52 }
 0x646   : > { %v3307_v54 = vmul.f32 %v3306_v53, %v3306_v53 }
 0x648   : > { %v3308_v25 = vsel %vm897_vm1, %v3307_v54, 0.0 }
 0x649   : > { %3309 = vadd.xlane.f32.xlu2 %v3308_v25 }
 0x6bc   : > { %v3310_v55 = vpop.xlane.xlu2 %3309 }
 0x6bd   : > { %v3311_v56 = vmul.f32 %v3310_v55, %v4813_v29  ;;  %v4461_v29 = vld [vmem:[%s5185_s28] ss:$0 sm:$0xff] }
 0x6bf   : > { %v3312_v57 = vadd.f32 1e-05, %v3311_v56 }
 0x6c1   : > { %4482 = vrsqrt.f32 %v3312_v57  ;;  %vm3319_vm8 = vweird.f32 %v3312_v57 }
 0x6c7   : > { %v4483_v39 = vpop.eup %4482 }
 0x6c8   : > { %v3314_v58 = vmul.f32 %v4483_v39, %v3312_v57  ;;  %vm3320_vm7 = vweird.f32 %v4483_v39 }
 0x6c9   : > { %vm3321_vm9 = vmor %vm3319_vm8, %vm3320_vm7 }
 0x6ca   : > { %v3315_v59 = vmul.f32 %v4483_v39, %v3314_v58 }
 0x6cc   : > { %v3316_v60 = vmul.f32 0.5, %v3315_v59 }
 0x6ce   : > { %v3317_v61 = vsub.f32 1.5, %v3316_v60 }
 0x6d0   : > { %v3318_v62 = vmul.f32 %v4483_v39, %v3317_v61 }
 0x6d2   : > { %v3322_v0 = vsel %vm3321_vm9, %v4483_v39, %v3318_v62 }
 0x6d3   : > { %v3323_v1 = vmul.f32 %v3322_v0, %v3306_v53 }
 0x6d5   : > { %v3327_v2 = vmul.f32 %v4460_v63, %v3323_v1  ;;  %3336 = sbr.rel (%p4265_p5) target bundleno = 1891 (0x763), region = 104 }
 0x6d7   : > { %v3331_v3 = vadd.f32 %v4461_v29, %v3327_v2 }
 0x6d9   : > { %3332 = vst.msk [vmem:[#allocation2] sm:$0xff] %vm897_vm1, %v3331_v3 }
 0x6da   : > { %v3340_v4 = vld [vmem:[%s5187_s23 + $0x18] sm:$0xff]  ;;  %v3339_v5 = vld [vmem:[%s5187_s23 + $0x10] sm:$0xff]  ;;  %v3338_v6 = vld [vmem:[%s5187_s23 + $0x8] sm:$0xff]  ;;  %vm3368_vm10 = vcmask 31744  }
 0x6db   : > { %3360 = vmatpush.msra.mxu0 %v3340_v4  ;;  %v3337_v7 = vld [vmem:[%s5187_s23] sm:$0xff] }
 0x6dc   : > { %v4484_v8 = vld [vmem:[%s5188_s26] ss:$0 sm:$0xff] }
 0x6dd   : > { %3361 = vmatpush.msra.mxu0 %v3339_v5 }
 0x6df   : > { %3362 = vmatpush.msra.mxu0 %v3338_v6 }
 0x6e1   : > { %3363 = vmatpush.msra.mxu0 %v3337_v7 }
 0x6e2   : > { %4266 = vmatmul.msk.f32.vlgmr.msra.gmra.mxu0 %vm897_vm1, %v3331_v3 }
 0x75f   : > { %v3365_v9 = vpop.f32.mrf.mxu0 }
 0x760   : > { %v3366_v10 = vadd.f32 %v4484_v8, %v3365_v9 }
 0x762   : > { %3369 = vst.msk [vmem:[%s5189_s0] sm:$0xff] %vm3368_vm10, %v3366_v10 }
 0x763 PF: > { %s5190_s3 = sld [smem:[#allocation3_spill]] }
 0x769   : > { %s29_s0 = sadd.s32 1, %s5190_s3  }
 0x76a   : > { %p26_p6 = scmp.ge.s32.totalorder %s29_s0, 4  }
 0x76c   :  { %28 = sbr.rel (!%p26_p6) target bundleno = 11 (0xb), region = 175 }

</bundles_post_ra>
